<compile_context>
chip_gen: v6e
topology: v6e:2x2x1
jax: 0.10.0
libtpu: 0.0.40
codegen_flags: <defaults>
</compile_context>

<pallas_src>
import functools

import jax
import jax.numpy as jnp
from jax import lax
from jax.experimental import pallas as pl
from jax.experimental.pallas import tpu as pltpu

LANE = 128        # lane-padded channel width for conv / fc outputs
_HEAD_TK = 8192   # K tile for the FC-head reduction


def _round_up(x, m):
    return ((x + m - 1) // m) * m


def _head_pad_k(kin):
    return kin if kin <= _HEAD_TK else _round_up(kin, _HEAD_TK)


# ----------------------------------------------------------------------------
# Fused 5x5 conv + bias + ReLU
# ----------------------------------------------------------------------------
def _conv5x5_kernel(xc_ref, w_ref, b_ref, o_ref):
    """One output row: out[j, o] = ReLU(sum_di xc[i+di, j, :] @ w[di] + b)."""
    i = pl.program_id(1)
    kh = w_ref.shape[0]
    acc = jnp.dot(xc_ref[0, i], w_ref[0], preferred_element_type=jnp.float32)
    for di in range(1, kh):
        acc = acc + jnp.dot(xc_ref[0, i + di], w_ref[di],
                            preferred_element_type=jnp.float32)
    acc = jnp.maximum(acc + b_ref[...], 0.0)
    o_ref[0, 0] = acc.astype(o_ref.dtype)


def conv5x5_relu(x, w, b):
    """Fused valid 5x5 conv + bias + ReLU.

    x: (N, H, W, Cphys) bf16 (may carry lane padding from the previous layer)
    w: (5, 5*Cin, Cout_pad) bf16  -- (kh, kw*cin) taps, lane-padded Cout
    b: (1, Cout_pad) f32
    returns (N, H-4, W-4, Cout_pad) bf16
    """
    kh = w.shape[0]
    cin = w.shape[1] // kh
    cout = w.shape[2]
    x = x[..., :cin]                                   # drop lane padding, if any
    n, h, wdt, _ = x.shape
    ho, wo = h - kh + 1, wdt - kh + 1
    # Fold the KW taps into the lane axis at trace time (5x a small activation;
    # the KH taps stay fused in-kernel -> no 25x im2col in HBM).
    xc = jnp.concatenate([x[:, :, dj:dj + wo, :] for dj in range(kh)], axis=-1)
    return pl.pallas_call(
        _conv5x5_kernel,
        out_shape=jax.ShapeDtypeStruct((n, ho, wo, cout), jnp.bfloat16),
        grid=(n, ho),
        in_specs=[
            pl.BlockSpec((1, h, wo, kh * cin), lambda b_, i: (b_, 0, 0, 0)),
            pl.BlockSpec((kh, kh * cin, cout), lambda b_, i: (0, 0, 0)),
            pl.BlockSpec((1, cout), lambda b_, i: (0, 0)),
        ],
        out_specs=pl.BlockSpec((1, 1, wo, cout), lambda b_, i: (b_, i, 0, 0)),
        compiler_params=pltpu.CompilerParams(
            dimension_semantics=("parallel", "parallel")),
    )(xc, w, b)


# ----------------------------------------------------------------------------
# Vectorised 2x2 max pool (stride 2, floor mode -> matches nn.MaxPool2d((2,2)))
# ----------------------------------------------------------------------------
def _maxpool2x2_kernel(x_ref, o_ref):
    c = o_ref.shape[-1]
    m = jnp.maximum(x_ref[0, 0], x_ref[0, 1])        # max over the 2 window rows
    o_ref[0, 0] = jnp.maximum(m[:, :c], m[:, c:])    # max over the 2 window cols


def maxpool2x2(x):
    n, h, wdt, c = x.shape
    hp, wp = h // 2, wdt // 2
    x = x[:, :2 * hp, :2 * wp, :]                    # floor: drop odd tail
    # Free row-major view: fold column pairs into the lane axis.
    xr = x.reshape(n, 2 * hp, wp, 2 * c)
    return pl.pallas_call(
        _maxpool2x2_kernel,
        out_shape=jax.ShapeDtypeStruct((n, hp, wp, c), x.dtype),
        grid=(n, hp),
        in_specs=[pl.BlockSpec((1, 2, wp, 2 * c), lambda b_, i: (b_, i, 0, 0))],
        out_specs=pl.BlockSpec((1, 1, wp, c), lambda b_, i: (b_, i, 0, 0)),
        compiler_params=pltpu.CompilerParams(
            dimension_semantics=("parallel", "parallel")),
    )(xr)


# ----------------------------------------------------------------------------
# Fused FC head:  fc1(+folded BatchNorm) + ReLU -> fc2, K-tiled reduction
# ----------------------------------------------------------------------------
def _mlp_head_kernel(x_ref, w1_ref, b1_ref, w2_ref, b2_ref, o_ref, acc_ref):
    k = pl.program_id(1)

    @pl.when(k == 0)
    def _():
        acc_ref[...] = jnp.zeros_like(acc_ref)

    acc_ref[...] += jnp.dot(x_ref[...], w1_ref[...],
                            preferred_element_type=jnp.float32)

    @pl.when(k == pl.num_programs(1) - 1)
    def _():
        h = jnp.maximum(acc_ref[...] + b1_ref[...], 0.0)     # fc1 + BN + ReLU (f32)
        logits = jnp.dot(h.astype(w2_ref.dtype), w2_ref[...],
                         preferred_element_type=jnp.float32) + b2_ref[...]
        o_ref[...] = logits.astype(o_ref.dtype)


def mlp_head(x, w1, b1, w2, b2):
    """x: (B, Kpad) bf16; w1: (Kpad, 128) bf16; w2: (128, 128) bf16."""
    bsz, k_pad = x.shape
    h1 = w1.shape[1]
    ncp = w2.shape[1]
    tk = k_pad if k_pad <= _HEAD_TK else _HEAD_TK     # divides k_pad by construction
    tb = bsz if bsz <= 128 else 128
    bp = _round_up(bsz, tb)
    if bp > bsz:
        x = jnp.pad(x, ((0, bp - bsz), (0, 0)))
    out = pl.pallas_call(
        _mlp_head_kernel,
        out_shape=jax.ShapeDtypeStruct((bp, ncp), jnp.float32),
        grid=(bp // tb, k_pad // tk),
        in_specs=[
            pl.BlockSpec((tb, tk), lambda bi, ki: (bi, ki)),
            pl.BlockSpec((tk, h1), lambda bi, ki: (ki, 0)),
            pl.BlockSpec((1, h1), lambda bi, ki: (0, 0)),
            pl.BlockSpec((h1, ncp), lambda bi, ki: (0, 0)),
            pl.BlockSpec((1, ncp), lambda bi, ki: (0, 0)),
        ],
        out_specs=pl.BlockSpec((tb, ncp), lambda bi, ki: (bi, 0)),
        scratch_shapes=[pltpu.VMEM((tb, h1), jnp.float32)],
        compiler_params=pltpu.CompilerParams(
            dimension_semantics=("parallel", "arbitrary")),
    )(x, w1, b1, w2, b2)
    return out[:bsz]


# ----------------------------------------------------------------------------
# Parameter construction / one-time preparation (plain-JAX glue)
# ----------------------------------------------------------------------------
def init_params(key, num_channels, num_classes, image_size):
    """Deterministic synthetic parameters matching the torch module's shapes.

    Conv weights stored HWIO (torch: OIHW); fc weights stored (in, out) with
    fc1 rows in torch's NCHW-flatten order (torch Linear stores (out, in)).
    """
    s = (image_size - 4 - 4) // 2
    fc_in = s * s * 100
    ks = jax.random.split(key, 12)

    def rnd(k, shape, scale):
        return (scale * jax.random.normal(k, shape)).astype(jnp.float32)

    return {
        "w1": rnd(ks[0], (5, 5, num_channels, 50), 0.1),
        "b1": rnd(ks[1], (50,), 0.1),
        "w2": rnd(ks[2], (5, 5, 50, 100), 0.05),
        "b2": rnd(ks[3], (100,), 0.1),
        "w_fc1": rnd(ks[4], (fc_in, 100), 0.02),
        "b_fc1": rnd(ks[5], (100,), 0.1),
        "bn_gamma": 1.0 + rnd(ks[6], (100,), 0.1),
        "bn_beta": rnd(ks[7], (100,), 0.1),
        "bn_mean": rnd(ks[8], (100,), 0.1),
        "bn_var": 1.0 + jnp.abs(rnd(ks[9], (100,), 0.1)),
        "w_fc2": rnd(ks[10], (100, num_classes), 0.1),
        "b_fc2": rnd(ks[11], (num_classes,), 0.1),
    }


def prepare_params(params, image_size):
    """One-time fold / lane-pad / permute into kernel-ready form (amortised)."""
    cp = LANE
    s = (image_size - 4 - 4) // 2            # pooled spatial size

    def conv_prep(w, b):
        kh, kw, cin, cout = w.shape
        w = jnp.pad(w, ((0, 0), (0, 0), (0, 0), (0, cp - cout)))
        w = w.reshape(kh, kw * cin, cp).astype(jnp.bfloat16)
        b = jnp.pad(b, (0, cp - cout)).astype(jnp.float32).reshape(1, cp)
        return w, b

    w1, b1 = conv_prep(params["w1"], params["b1"])
    w2, b2 = conv_prep(params["w2"], params["b2"])

    # fc1 with BatchNorm1d (eval) folded in; rows permuted from torch's
    # NCHW-flatten order to this implementation's padded-NHWC flatten order.
    c2 = params["w2"].shape[-1]               # 100 conv2 output channels
    h1 = params["w_fc1"].shape[-1]            # 100 hidden units
    scale = params["bn_gamma"] / jnp.sqrt(params["bn_var"] + 1e-5)
    wf = params["w_fc1"] * scale[None, :]
    bf = (params["b_fc1"] - params["bn_mean"]) * scale + params["bn_beta"]
    wf = wf.reshape(c2, s, s, h1)             # rows were (c, h, w)-ordered
    wf = jnp.transpose(wf, (1, 2, 0, 3))      # -> (h, w, c, out)
    wf = jnp.pad(wf, ((0, 0), (0, 0), (0, cp - c2), (0, cp - h1)))
    wf = wf.reshape(s * s * cp, cp)
    k_pad = _head_pad_k(s * s * cp)
    if k_pad > wf.shape[0]:
        wf = jnp.pad(wf, ((0, k_pad - wf.shape[0]), (0, 0)))
    w_fc1 = wf.astype(jnp.bfloat16)
    b_fc1 = jnp.pad(bf, (0, cp - h1)).astype(jnp.float32).reshape(1, cp)

    nin, ncls = params["w_fc2"].shape
    w_fc2 = jnp.pad(params["w_fc2"],
                    ((0, cp - nin), (0, cp - ncls))).astype(jnp.bfloat16)
    b_fc2 = jnp.pad(params["b_fc2"], (0, cp - ncls)).astype(jnp.float32).reshape(1, cp)

    return {"w1": w1, "b1": b1, "w2": w2, "b2": b2,
            "w_fc1": w_fc1, "b_fc1": b_fc1, "w_fc2": w_fc2, "b_fc2": b_fc2}


# ----------------------------------------------------------------------------
# Forward pass
# ----------------------------------------------------------------------------
def cnn2d_forward(x_nchw, p, *, num_classes):
    """CNN2D forward.  x_nchw: (N, C, H, W); p: output of prepare_params()."""
    x = jnp.transpose(x_nchw, (0, 2, 3, 1)).astype(jnp.bfloat16)   # NCHW -> NHWC

    y = conv5x5_relu(x, p["w1"], p["b1"])     # (N, H-4, W-4, 128)
    y = conv5x5_relu(y, p["w2"], p["b2"])     # (N, H-8, W-8, 128)
    y = maxpool2x2(y)                         # (N, Hp, Wp, 128)

    n = y.shape[0]
    feat = y.reshape(n, -1)                   # NHWC flatten (fc1 rows pre-permuted)
    k_pad = p["w_fc1"].shape[0]
    if k_pad > feat.shape[1]:
        feat = jnp.pad(feat, ((0, 0), (0, k_pad - feat.shape[1])))

    logits = mlp_head(feat, p["w_fc1"], p["b_fc1"], p["w_fc2"], p["b_fc2"])
    return logits[:, :num_classes]


def cnn2d_reference(x_nchw, params):
    """Plain-XLA f32 reference of the same forward pass (for validation)."""
    dn = ("NHWC", "HWIO", "NHWC")
    x = jnp.transpose(x_nchw, (0, 2, 3, 1)).astype(jnp.float32)
    y = lax.conv_general_dilated(x, params["w1"], (1, 1), "VALID",
                                 dimension_numbers=dn) + params["b1"]
    y = jnp.maximum(y, 0.0)
    y = lax.conv_general_dilated(y, params["w2"], (1, 1), "VALID",
                                 dimension_numbers=dn) + params["b2"]
    y = jnp.maximum(y, 0.0)
    n, h, wdt, c = y.shape
    hp, wp = h // 2, wdt // 2
    y = y[:, :2 * hp, :2 * wp, :].reshape(n, hp, 2, wp, 2, c).max(axis=(2, 4))
    y = jnp.transpose(y, (0, 3, 1, 2)).reshape(n, -1)     # torch NCHW flatten
    h1 = y @ params["w_fc1"] + params["b_fc1"]
    scale = params["bn_gamma"] / jnp.sqrt(params["bn_var"] + 1e-5)
    h1 = (h1 - params["bn_mean"]) * scale + params["bn_beta"]
    h1 = jnp.maximum(h1, 0.0)
    return h1 @ params["w_fc2"] + params["b_fc2"]


# ----------------------------------------------------------------------------
if __name__ == "__main__":
    batch = 2
    num_channels = 4
    num_classes = 3
    image_size = 16   # small version of the default 63

    key = jax.random.PRNGKey(0)
    k_x, k_p = jax.random.split(key)
    x = jax.random.normal(k_x, (batch, num_channels, image_size, image_size),
                          dtype=jnp.float32)
    params = init_params(k_p, num_channels, num_classes, image_size)
    prepared = prepare_params(params, image_size)   # one-time fold/pad/permute

    fwd = jax.jit(functools.partial(cnn2d_forward, num_classes=num_classes))
    out = jax.block_until_ready(fwd(x, prepared))

    assert out.shape == (batch, num_classes), out.shape
    assert out.dtype == jnp.float32
    assert bool(jnp.all(jnp.isfinite(out)))

    # bf16-tolerance check against the plain-XLA f32 reference
    ref = cnn2d_reference(x, params)
    assert bool(jnp.allclose(out, ref, rtol=2e-1, atol=2.5e-1)), (
        float(jnp.max(jnp.abs(out - ref))))

    print("KERNEL_OK")
</pallas_src>

<mosaic_0001>
module attributes {stable_mosaic.version = 11 : i64} {
  func.func @_conv5x5_kernel(%arg0: i32, %arg1: i32, %arg2: memref<1x16x12x20xbf16, #tpu.memory_space<vmem>>, %arg3: memref<5x20x128xbf16, #tpu.memory_space<vmem>>, %arg4: memref<1x128xf32, #tpu.memory_space<vmem>>, %arg5: memref<1x1x12x128xbf16, #tpu.memory_space<vmem>>) attributes {dimension_semantics = [#tpu.dimension_semantics<parallel>, #tpu.dimension_semantics<parallel>], iteration_bounds = array<i64: 2, 12>, scalar_prefetch = 0 : i64, scratch_operands = 0 : i64, tpu.core_type = #tpu.core_type<tc>, window_params = [{transform_indices = @transform_0, window_bounds = array<i64: 1, 16, 12, 20>}, {pipeline_mode = #tpu.pipeline_mode<synchronous>, transform_indices = @transform_1, window_bounds = array<i64: 5, 20, 128>}, {pipeline_mode = #tpu.pipeline_mode<synchronous>, transform_indices = @transform_2, window_bounds = array<i64: 1, 128>}, {transform_indices = @transform_3, window_bounds = array<i64: 1, 1, 12, 128>}]} {
    %c0 = arith.constant 0 : index
    %0 = arith.index_cast %arg1 : i32 to index
    %c0_0 = arith.constant 0 : index
    %c0_1 = arith.constant 0 : index
    %1 = vector.load %arg2[%c0, %0, %c0_0, %c0_1] : memref<1x16x12x20xbf16, #tpu.memory_space<vmem>>, vector<1x1x12x20xbf16>
    %2 = vector.shape_cast %1 : vector<1x1x12x20xbf16> to vector<12x20xbf16>
    %c0_2 = arith.constant 0 : index
    %c0_3 = arith.constant 0 : index
    %c0_4 = arith.constant 0 : index
    %3 = vector.load %arg3[%c0_2, %c0_3, %c0_4] : memref<5x20x128xbf16, #tpu.memory_space<vmem>>, vector<1x20x128xbf16>
    %4 = vector.shape_cast %3 : vector<1x20x128xbf16> to vector<20x128xbf16>
    %cst = arith.constant dense<0.000000e+00> : vector<12x128xf32>
    %5 = tpu.matmul %2, %4, %cst {dimension_numbers = #tpu.dot_dimension_numbers<[1], [0], [0], [1], [0, 0, 1, 1], [], []>} : vector<12x20xbf16>, vector<20x128xbf16>, vector<12x128xf32> -> vector<12x128xf32>
    %c1_i32 = arith.constant 1 : i32
    %6 = arith.addi %arg1, %c1_i32 : i32
    %c0_5 = arith.constant 0 : index
    %7 = arith.index_cast %6 : i32 to index
    %c0_6 = arith.constant 0 : index
    %c0_7 = arith.constant 0 : index
    %8 = vector.load %arg2[%c0_5, %7, %c0_6, %c0_7] : memref<1x16x12x20xbf16, #tpu.memory_space<vmem>>, vector<1x1x12x20xbf16>
    %9 = vector.shape_cast %8 : vector<1x1x12x20xbf16> to vector<12x20xbf16>
    %c1 = arith.constant 1 : index
    %c0_8 = arith.constant 0 : index
    %c0_9 = arith.constant 0 : index
    %10 = vector.load %arg3[%c1, %c0_8, %c0_9] : memref<5x20x128xbf16, #tpu.memory_space<vmem>>, vector<1x20x128xbf16>
    %11 = vector.shape_cast %10 : vector<1x20x128xbf16> to vector<20x128xbf16>
    %cst_10 = arith.constant dense<0.000000e+00> : vector<12x128xf32>
    %12 = tpu.matmul %9, %11, %cst_10 {dimension_numbers = #tpu.dot_dimension_numbers<[1], [0], [0], [1], [0, 0, 1, 1], [], []>} : vector<12x20xbf16>, vector<20x128xbf16>, vector<12x128xf32> -> vector<12x128xf32>
    %13 = arith.addf %5, %12 : vector<12x128xf32>
    %c2_i32 = arith.constant 2 : i32
    %14 = arith.addi %arg1, %c2_i32 : i32
    %c0_11 = arith.constant 0 : index
    %15 = arith.index_cast %14 : i32 to index
    %c0_12 = arith.constant 0 : index
    %c0_13 = arith.constant 0 : index
    %16 = vector.load %arg2[%c0_11, %15, %c0_12, %c0_13] : memref<1x16x12x20xbf16, #tpu.memory_space<vmem>>, vector<1x1x12x20xbf16>
    %17 = vector.shape_cast %16 : vector<1x1x12x20xbf16> to vector<12x20xbf16>
    %c2 = arith.constant 2 : index
    %c0_14 = arith.constant 0 : index
    %c0_15 = arith.constant 0 : index
    %18 = vector.load %arg3[%c2, %c0_14, %c0_15] : memref<5x20x128xbf16, #tpu.memory_space<vmem>>, vector<1x20x128xbf16>
    %19 = vector.shape_cast %18 : vector<1x20x128xbf16> to vector<20x128xbf16>
    %cst_16 = arith.constant dense<0.000000e+00> : vector<12x128xf32>
    %20 = tpu.matmul %17, %19, %cst_16 {dimension_numbers = #tpu.dot_dimension_numbers<[1], [0], [0], [1], [0, 0, 1, 1], [], []>} : vector<12x20xbf16>, vector<20x128xbf16>, vector<12x128xf32> -> vector<12x128xf32>
    %21 = arith.addf %13, %20 : vector<12x128xf32>
    %c3_i32 = arith.constant 3 : i32
    %22 = arith.addi %arg1, %c3_i32 : i32
    %c0_17 = arith.constant 0 : index
    %23 = arith.index_cast %22 : i32 to index
    %c0_18 = arith.constant 0 : index
    %c0_19 = arith.constant 0 : index
    %24 = vector.load %arg2[%c0_17, %23, %c0_18, %c0_19] : memref<1x16x12x20xbf16, #tpu.memory_space<vmem>>, vector<1x1x12x20xbf16>
    %25 = vector.shape_cast %24 : vector<1x1x12x20xbf16> to vector<12x20xbf16>
    %c3 = arith.constant 3 : index
    %c0_20 = arith.constant 0 : index
    %c0_21 = arith.constant 0 : index
    %26 = vector.load %arg3[%c3, %c0_20, %c0_21] : memref<5x20x128xbf16, #tpu.memory_space<vmem>>, vector<1x20x128xbf16>
    %27 = vector.shape_cast %26 : vector<1x20x128xbf16> to vector<20x128xbf16>
    %cst_22 = arith.constant dense<0.000000e+00> : vector<12x128xf32>
    %28 = tpu.matmul %25, %27, %cst_22 {dimension_numbers = #tpu.dot_dimension_numbers<[1], [0], [0], [1], [0, 0, 1, 1], [], []>} : vector<12x20xbf16>, vector<20x128xbf16>, vector<12x128xf32> -> vector<12x128xf32>
    %29 = arith.addf %21, %28 : vector<12x128xf32>
    %c4_i32 = arith.constant 4 : i32
    %30 = arith.addi %arg1, %c4_i32 : i32
    %c0_23 = arith.constant 0 : index
    %31 = arith.index_cast %30 : i32 to index
    %c0_24 = arith.constant 0 : index
    %c0_25 = arith.constant 0 : index
    %32 = vector.load %arg2[%c0_23, %31, %c0_24, %c0_25] : memref<1x16x12x20xbf16, #tpu.memory_space<vmem>>, vector<1x1x12x20xbf16>
    %33 = vector.shape_cast %32 : vector<1x1x12x20xbf16> to vector<12x20xbf16>
    %c4 = arith.constant 4 : index
    %c0_26 = arith.constant 0 : index
    %c0_27 = arith.constant 0 : index
    %34 = vector.load %arg3[%c4, %c0_26, %c0_27] : memref<5x20x128xbf16, #tpu.memory_space<vmem>>, vector<1x20x128xbf16>
    %35 = vector.shape_cast %34 : vector<1x20x128xbf16> to vector<20x128xbf16>
    %cst_28 = arith.constant dense<0.000000e+00> : vector<12x128xf32>
    %36 = tpu.matmul %33, %35, %cst_28 {dimension_numbers = #tpu.dot_dimension_numbers<[1], [0], [0], [1], [0, 0, 1, 1], [], []>} : vector<12x20xbf16>, vector<20x128xbf16>, vector<12x128xf32> -> vector<12x128xf32>
    %37 = arith.addf %29, %36 : vector<12x128xf32>
    %c0_29 = arith.constant 0 : index
    %c0_30 = arith.constant 0 : index
    %38 = vector.load %arg4[%c0_29, %c0_30] : memref<1x128xf32, #tpu.memory_space<vmem>>, vector<1x128xf32>
    %39 = vector.broadcast %38 : vector<1x128xf32> to vector<12x128xf32>
    %40 = arith.addf %37, %39 : vector<12x128xf32>
    %cst_31 = arith.constant 0.000000e+00 : f32
    %41 = vector.broadcast %cst_31 : f32 to vector<12x128xf32>
    %42 = arith.maximumf %40, %41 : vector<12x128xf32>
    %43 = arith.truncf %42 : vector<12x128xf32> to vector<12x128xbf16>
    %c0_32 = arith.constant 0 : index
    %c0_33 = arith.constant 0 : index
    %c0_34 = arith.constant 0 : index
    %c0_35 = arith.constant 0 : index
    %44 = vector.load %arg5[%c0_32, %c0_33, %c0_34, %c0_35] : memref<1x1x12x128xbf16, #tpu.memory_space<vmem>>, vector<1x1x12x128xbf16>
    %45 = vector.shape_cast %44 : vector<1x1x12x128xbf16> to vector<12x128xbf16>
    %46 = vector.shape_cast %43 : vector<12x128xbf16> to vector<1x1x12x128xbf16>
    tpu.vector_store %arg5[%c0_32, %c0_33, %c0_34, %c0_35], %46 {strides = array<i32>} : memref<1x1x12x128xbf16, #tpu.memory_space<vmem>>, vector<1x1x12x128xbf16>,
    return
  }
  func.func @transform_0(%arg0: i32, %arg1: i32) -> (i32, i32, i32, i32) {
    %c0_i32 = arith.constant 0 : i32
    %c0_i32_0 = arith.constant 0 : i32
    %c0_i32_1 = arith.constant 0 : i32
    %c0_i32_2 = arith.constant 0 : i32
    return %arg0, %c0_i32, %c0_i32_0, %c0_i32_1 : i32, i32, i32, i32
  }
  func.func @transform_1(%arg0: i32, %arg1: i32) -> (i32, i32, i32) {
    %c0_i32 = arith.constant 0 : i32
    %c0_i32_0 = arith.constant 0 : i32
    %c0_i32_1 = arith.constant 0 : i32
    %c0_i32_2 = arith.constant 0 : i32
    return %c0_i32, %c0_i32_0, %c0_i32_1 : i32, i32, i32
  }
  func.func @transform_2(%arg0: i32, %arg1: i32) -> (i32, i32) {
    %c0_i32 = arith.constant 0 : i32
    %c0_i32_0 = arith.constant 0 : i32
    %c0_i32_1 = arith.constant 0 : i32
    return %c0_i32, %c0_i32_0 : i32, i32
  }
  func.func @transform_3(%arg0: i32, %arg1: i32) -> (i32, i32, i32, i32) {
    %c0_i32 = arith.constant 0 : i32
    %c0_i32_0 = arith.constant 0 : i32
    %c0_i32_1 = arith.constant 0 : i32
    return %arg0, %arg1, %c0_i32, %c0_i32_0 : i32, i32, i32, i32
  }
}

module attributes {stable_mosaic.version = 11 : i64} {
  func.func @_conv5x5_kernel(%arg0: i32, %arg1: i32, %arg2: memref<1x12x8x250xbf16, #tpu.memory_space<vmem>>, %arg3: memref<5x250x128xbf16, #tpu.memory_space<vmem>>, %arg4: memref<1x128xf32, #tpu.memory_space<vmem>>, %arg5: memref<1x1x8x128xbf16, #tpu.memory_space<vmem>>) attributes {dimension_semantics = [#tpu.dimension_semantics<parallel>, #tpu.dimension_semantics<parallel>], iteration_bounds = array<i64: 2, 8>, scalar_prefetch = 0 : i64, scratch_operands = 0 : i64, tpu.core_type = #tpu.core_type<tc>, window_params = [{transform_indices = @transform_0, window_bounds = array<i64: 1, 12, 8, 250>}, {pipeline_mode = #tpu.pipeline_mode<synchronous>, transform_indices = @transform_1, window_bounds = array<i64: 5, 250, 128>}, {pipeline_mode = #tpu.pipeline_mode<synchronous>, transform_indices = @transform_2, window_bounds = array<i64: 1, 128>}, {transform_indices = @transform_3, window_bounds = array<i64: 1, 1, 8, 128>}]} {
    %c0 = arith.constant 0 : index
    %0 = arith.index_cast %arg1 : i32 to index
    %c0_0 = arith.constant 0 : index
    %c0_1 = arith.constant 0 : index
    %1 = vector.load %arg2[%c0, %0, %c0_0, %c0_1] : memref<1x12x8x250xbf16, #tpu.memory_space<vmem>>, vector<1x1x8x250xbf16>
    %2 = vector.shape_cast %1 : vector<1x1x8x250xbf16> to vector<8x250xbf16>
    %c0_2 = arith.constant 0 : index
    %c0_3 = arith.constant 0 : index
    %c0_4 = arith.constant 0 : index
    %3 = vector.load %arg3[%c0_2, %c0_3, %c0_4] : memref<5x250x128xbf16, #tpu.memory_space<vmem>>, vector<1x250x128xbf16>
    %4 = vector.shape_cast %3 : vector<1x250x128xbf16> to vector<250x128xbf16>
    %cst = arith.constant dense<0.000000e+00> : vector<8x128xf32>
    %5 = tpu.matmul %2, %4, %cst {dimension_numbers = #tpu.dot_dimension_numbers<[1], [0], [0], [1], [0, 0, 1, 1], [], []>} : vector<8x250xbf16>, vector<250x128xbf16>, vector<8x128xf32> -> vector<8x128xf32>
    %c1_i32 = arith.constant 1 : i32
    %6 = arith.addi %arg1, %c1_i32 : i32
    %c0_5 = arith.constant 0 : index
    %7 = arith.index_cast %6 : i32 to index
    %c0_6 = arith.constant 0 : index
    %c0_7 = arith.constant 0 : index
    %8 = vector.load %arg2[%c0_5, %7, %c0_6, %c0_7] : memref<1x12x8x250xbf16, #tpu.memory_space<vmem>>, vector<1x1x8x250xbf16>
    %9 = vector.shape_cast %8 : vector<1x1x8x250xbf16> to vector<8x250xbf16>
    %c1 = arith.constant 1 : index
    %c0_8 = arith.constant 0 : index
    %c0_9 = arith.constant 0 : index
    %10 = vector.load %arg3[%c1, %c0_8, %c0_9] : memref<5x250x128xbf16, #tpu.memory_space<vmem>>, vector<1x250x128xbf16>
    %11 = vector.shape_cast %10 : vector<1x250x128xbf16> to vector<250x128xbf16>
    %cst_10 = arith.constant dense<0.000000e+00> : vector<8x128xf32>
    %12 = tpu.matmul %9, %11, %cst_10 {dimension_numbers = #tpu.dot_dimension_numbers<[1], [0], [0], [1], [0, 0, 1, 1], [], []>} : vector<8x250xbf16>, vector<250x128xbf16>, vector<8x128xf32> -> vector<8x128xf32>
    %13 = arith.addf %5, %12 : vector<8x128xf32>
    %c2_i32 = arith.constant 2 : i32
    %14 = arith.addi %arg1, %c2_i32 : i32
    %c0_11 = arith.constant 0 : index
    %15 = arith.index_cast %14 : i32 to index
    %c0_12 = arith.constant 0 : index
    %c0_13 = arith.constant 0 : index
    %16 = vector.load %arg2[%c0_11, %15, %c0_12, %c0_13] : memref<1x12x8x250xbf16, #tpu.memory_space<vmem>>, vector<1x1x8x250xbf16>
    %17 = vector.shape_cast %16 : vector<1x1x8x250xbf16> to vector<8x250xbf16>
    %c2 = arith.constant 2 : index
    %c0_14 = arith.constant 0 : index
    %c0_15 = arith.constant 0 : index
    %18 = vector.load %arg3[%c2, %c0_14, %c0_15] : memref<5x250x128xbf16, #tpu.memory_space<vmem>>, vector<1x250x128xbf16>
    %19 = vector.shape_cast %18 : vector<1x250x128xbf16> to vector<250x128xbf16>
    %cst_16 = arith.constant dense<0.000000e+00> : vector<8x128xf32>
    %20 = tpu.matmul %17, %19, %cst_16 {dimension_numbers = #tpu.dot_dimension_numbers<[1], [0], [0], [1], [0, 0, 1, 1], [], []>} : vector<8x250xbf16>, vector<250x128xbf16>, vector<8x128xf32> -> vector<8x128xf32>
    %21 = arith.addf %13, %20 : vector<8x128xf32>
    %c3_i32 = arith.constant 3 : i32
    %22 = arith.addi %arg1, %c3_i32 : i32
    %c0_17 = arith.constant 0 : index
    %23 = arith.index_cast %22 : i32 to index
    %c0_18 = arith.constant 0 : index
    %c0_19 = arith.constant 0 : index
    %24 = vector.load %arg2[%c0_17, %23, %c0_18, %c0_19] : memref<1x12x8x250xbf16, #tpu.memory_space<vmem>>, vector<1x1x8x250xbf16>
    %25 = vector.shape_cast %24 : vector<1x1x8x250xbf16> to vector<8x250xbf16>
    %c3 = arith.constant 3 : index
    %c0_20 = arith.constant 0 : index
    %c0_21 = arith.constant 0 : index
    %26 = vector.load %arg3[%c3, %c0_20, %c0_21] : memref<5x250x128xbf16, #tpu.memory_space<vmem>>, vector<1x250x128xbf16>
    %27 = vector.shape_cast %26 : vector<1x250x128xbf16> to vector<250x128xbf16>
    %cst_22 = arith.constant dense<0.000000e+00> : vector<8x128xf32>
    %28 = tpu.matmul %25, %27, %cst_22 {dimension_numbers = #tpu.dot_dimension_numbers<[1], [0], [0], [1], [0, 0, 1, 1], [], []>} : vector<8x250xbf16>, vector<250x128xbf16>, vector<8x128xf32> -> vector<8x128xf32>
    %29 = arith.addf %21, %28 : vector<8x128xf32>
    %c4_i32 = arith.constant 4 : i32
    %30 = arith.addi %arg1, %c4_i32 : i32
    %c0_23 = arith.constant 0 : index
    %31 = arith.index_cast %30 : i32 to index
    %c0_24 = arith.constant 0 : index
    %c0_25 = arith.constant 0 : index
    %32 = vector.load %arg2[%c0_23, %31, %c0_24, %c0_25] : memref<1x12x8x250xbf16, #tpu.memory_space<vmem>>, vector<1x1x8x250xbf16>
    %33 = vector.shape_cast %32 : vector<1x1x8x250xbf16> to vector<8x250xbf16>
    %c4 = arith.constant 4 : index
    %c0_26 = arith.constant 0 : index
    %c0_27 = arith.constant 0 : index
    %34 = vector.load %arg3[%c4, %c0_26, %c0_27] : memref<5x250x128xbf16, #tpu.memory_space<vmem>>, vector<1x250x128xbf16>
    %35 = vector.shape_cast %34 : vector<1x250x128xbf16> to vector<250x128xbf16>
    %cst_28 = arith.constant dense<0.000000e+00> : vector<8x128xf32>
    %36 = tpu.matmul %33, %35, %cst_28 {dimension_numbers = #tpu.dot_dimension_numbers<[1], [0], [0], [1], [0, 0, 1, 1], [], []>} : vector<8x250xbf16>, vector<250x128xbf16>, vector<8x128xf32> -> vector<8x128xf32>
    %37 = arith.addf %29, %36 : vector<8x128xf32>
    %c0_29 = arith.constant 0 : index
    %c0_30 = arith.constant 0 : index
    %38 = vector.load %arg4[%c0_29, %c0_30] : memref<1x128xf32, #tpu.memory_space<vmem>>, vector<1x128xf32>
    %39 = vector.broadcast %38 : vector<1x128xf32> to vector<8x128xf32>
    %40 = arith.addf %37, %39 : vector<8x128xf32>
    %cst_31 = arith.constant 0.000000e+00 : f32
    %41 = vector.broadcast %cst_31 : f32 to vector<8x128xf32>
    %42 = arith.maximumf %40, %41 : vector<8x128xf32>
    %43 = arith.truncf %42 : vector<8x128xf32> to vector<8x128xbf16>
    %c0_32 = arith.constant 0 : index
    %c0_33 = arith.constant 0 : index
    %c0_34 = arith.constant 0 : index
    %c0_35 = arith.constant 0 : index
    %44 = vector.load %arg5[%c0_32, %c0_33, %c0_34, %c0_35] : memref<1x1x8x128xbf16, #tpu.memory_space<vmem>>, vector<1x1x8x128xbf16>
    %45 = vector.shape_cast %44 : vector<1x1x8x128xbf16> to vector<8x128xbf16>
    %46 = vector.shape_cast %43 : vector<8x128xbf16> to vector<1x1x8x128xbf16>
    tpu.vector_store %arg5[%c0_32, %c0_33, %c0_34, %c0_35], %46 {strides = array<i32>} : memref<1x1x8x128xbf16, #tpu.memory_space<vmem>>, vector<1x1x8x128xbf16>,
    return
  }
  func.func @transform_0(%arg0: i32, %arg1: i32) -> (i32, i32, i32, i32) {
    %c0_i32 = arith.constant 0 : i32
    %c0_i32_0 = arith.constant 0 : i32
    %c0_i32_1 = arith.constant 0 : i32
    %c0_i32_2 = arith.constant 0 : i32
    return %arg0, %c0_i32, %c0_i32_0, %c0_i32_1 : i32, i32, i32, i32
  }
  func.func @transform_1(%arg0: i32, %arg1: i32) -> (i32, i32, i32) {
    %c0_i32 = arith.constant 0 : i32
    %c0_i32_0 = arith.constant 0 : i32
    %c0_i32_1 = arith.constant 0 : i32
    %c0_i32_2 = arith.constant 0 : i32
    return %c0_i32, %c0_i32_0, %c0_i32_1 : i32, i32, i32
  }
  func.func @transform_2(%arg0: i32, %arg1: i32) -> (i32, i32) {
    %c0_i32 = arith.constant 0 : i32
    %c0_i32_0 = arith.constant 0 : i32
    %c0_i32_1 = arith.constant 0 : i32
    return %c0_i32, %c0_i32_0 : i32, i32
  }
  func.func @transform_3(%arg0: i32, %arg1: i32) -> (i32, i32, i32, i32) {
    %c0_i32 = arith.constant 0 : i32
    %c0_i32_0 = arith.constant 0 : i32
    %c0_i32_1 = arith.constant 0 : i32
    return %arg0, %arg1, %c0_i32, %c0_i32_0 : i32, i32, i32, i32
  }
}

module attributes {stable_mosaic.version = 11 : i64} {
  func.func @_maxpool2x2_kernel(%arg0: i32, %arg1: i32, %arg2: memref<1x2x4x256xbf16, #tpu.memory_space<vmem>>, %arg3: memref<1x1x4x128xbf16, #tpu.memory_space<vmem>>) attributes {dimension_semantics = [#tpu.dimension_semantics<parallel>, #tpu.dimension_semantics<parallel>], iteration_bounds = array<i64: 2, 4>, scalar_prefetch = 0 : i64, scratch_operands = 0 : i64, tpu.core_type = #tpu.core_type<tc>, window_params = [{transform_indices = @transform_0, window_bounds = array<i64: 1, 2, 4, 256>}, {transform_indices = @transform_1, window_bounds = array<i64: 1, 1, 4, 128>}]} {
    %c0 = arith.constant 0 : index
    %c0_0 = arith.constant 0 : index
    %c0_1 = arith.constant 0 : index
    %c0_2 = arith.constant 0 : index
    %0 = vector.load %arg2[%c0, %c0_0, %c0_1, %c0_2] : memref<1x2x4x256xbf16, #tpu.memory_space<vmem>>, vector<1x1x4x256xbf16>
    %1 = vector.shape_cast %0 : vector<1x1x4x256xbf16> to vector<4x256xbf16>
    %c0_3 = arith.constant 0 : index
    %c1 = arith.constant 1 : index
    %c0_4 = arith.constant 0 : index
    %c0_5 = arith.constant 0 : index
    %2 = vector.load %arg2[%c0_3, %c1, %c0_4, %c0_5] : memref<1x2x4x256xbf16, #tpu.memory_space<vmem>>, vector<1x1x4x256xbf16>
    %3 = vector.shape_cast %2 : vector<1x1x4x256xbf16> to vector<4x256xbf16>
    %4 = arith.maximumf %1, %3 : vector<4x256xbf16>
    %5 = vector.extract_strided_slice %4 {offsets = [0, 0], sizes = [4, 128], strides = [1, 1]} : vector<4x256xbf16> to vector<4x128xbf16>
    %6 = vector.extract_strided_slice %4 {offsets = [0, 128], sizes = [4, 128], strides = [1, 1]} : vector<4x256xbf16> to vector<4x128xbf16>
    %7 = arith.maximumf %5, %6 : vector<4x128xbf16>
    %c0_6 = arith.constant 0 : index
    %c0_7 = arith.constant 0 : index
    %c0_8 = arith.constant 0 : index
    %c0_9 = arith.constant 0 : index
    %8 = vector.load %arg3[%c0_6, %c0_7, %c0_8, %c0_9] : memref<1x1x4x128xbf16, #tpu.memory_space<vmem>>, vector<1x1x4x128xbf16>
    %9 = vector.shape_cast %8 : vector<1x1x4x128xbf16> to vector<4x128xbf16>
    %10 = vector.shape_cast %7 : vector<4x128xbf16> to vector<1x1x4x128xbf16>
    tpu.vector_store %arg3[%c0_6, %c0_7, %c0_8, %c0_9], %10 {strides = array<i32>} : memref<1x1x4x128xbf16, #tpu.memory_space<vmem>>, vector<1x1x4x128xbf16>,
    return
  }
  func.func @transform_0(%arg0: i32, %arg1: i32) -> (i32, i32, i32, i32) {
    %c0_i32 = arith.constant 0 : i32
    %c0_i32_0 = arith.constant 0 : i32
    %c0_i32_1 = arith.constant 0 : i32
    return %arg0, %arg1, %c0_i32, %c0_i32_0 : i32, i32, i32, i32
  }
  func.func @transform_1(%arg0: i32, %arg1: i32) -> (i32, i32, i32, i32) {
    %c0_i32 = arith.constant 0 : i32
    %c0_i32_0 = arith.constant 0 : i32
    %c0_i32_1 = arith.constant 0 : i32
    return %arg0, %arg1, %c0_i32, %c0_i32_0 : i32, i32, i32, i32
  }
}

module attributes {stable_mosaic.version = 11 : i64} {
  func.func @_mlp_head_kernel(%arg0: i32, %arg1: i32, %arg2: memref<2x2048xbf16, #tpu.memory_space<vmem>>, %arg3: memref<2048x128xbf16, #tpu.memory_space<vmem>>, %arg4: memref<1x128xf32, #tpu.memory_space<vmem>>, %arg5: memref<128x128xbf16, #tpu.memory_space<vmem>>, %arg6: memref<1x128xf32, #tpu.memory_space<vmem>>, %arg7: memref<2x128xf32, #tpu.memory_space<vmem>>, %arg8: memref<2x128xf32, #tpu.memory_space<vmem>>) attributes {dimension_semantics = [#tpu.dimension_semantics<parallel>, #tpu.dimension_semantics<arbitrary>], iteration_bounds = array<i64: 1, 1>, scalar_prefetch = 0 : i64, scratch_operands = 1 : i64, tpu.core_type = #tpu.core_type<tc>, window_params = [{transform_indices = @transform_0, window_bounds = array<i64: 2, 2048>}, {transform_indices = @transform_1, window_bounds = array<i64: 2048, 128>}, {pipeline_mode = #tpu.pipeline_mode<synchronous>, transform_indices = @transform_2, window_bounds = array<i64: 1, 128>}, {pipeline_mode = #tpu.pipeline_mode<synchronous>, transform_indices = @transform_3, window_bounds = array<i64: 128, 128>}, {pipeline_mode = #tpu.pipeline_mode<synchronous>, transform_indices = @transform_4, window_bounds = array<i64: 1, 128>}, {transform_indices = @transform_5, window_bounds = array<i64: 2, 128>}]} {
    %c0_i32 = arith.constant 0 : i32
    %0 = arith.cmpi eq, %arg1, %c0_i32 : i32
    %1 = arith.extui %0 : i1 to i32
    %c0_i32_0 = arith.constant 0 : i32
    %2 = arith.cmpi ne, %1, %c0_i32_0 : i32
    scf.if %2 {
      %cst_10 = arith.constant 0.000000e+00 : f32
      %12 = vector.broadcast %cst_10 : f32 to vector<2x128xf32>
      %c0_11 = arith.constant 0 : index
      %c0_12 = arith.constant 0 : index
      %13 = vector.load %arg8[%c0_11, %c0_12] : memref<2x128xf32, #tpu.memory_space<vmem>>, vector<2x128xf32>
      tpu.vector_store %arg8[%c0_11, %c0_12], %12 {strides = array<i32>} : memref<2x128xf32, #tpu.memory_space<vmem>>, vector<2x128xf32>,
    } else {
    }
    %c0 = arith.constant 0 : index
    %c0_1 = arith.constant 0 : index
    %3 = vector.load %arg8[%c0, %c0_1] : memref<2x128xf32, #tpu.memory_space<vmem>>, vector<2x128xf32>
    %c0_2 = arith.constant 0 : index
    %c0_3 = arith.constant 0 : index
    %4 = vector.load %arg2[%c0_2, %c0_3] : memref<2x2048xbf16, #tpu.memory_space<vmem>>, vector<2x2048xbf16>
    %c0_4 = arith.constant 0 : index
    %c0_5 = arith.constant 0 : index
    %5 = vector.load %arg3[%c0_4, %c0_5] : memref<2048x128xbf16, #tpu.memory_space<vmem>>, vector<2048x128xbf16>
    %cst = arith.constant dense<0.000000e+00> : vector<2x128xf32>
    %6 = tpu.matmul %4, %5, %cst {dimension_numbers = #tpu.dot_dimension_numbers<[1], [0], [0], [1], [0, 0, 1, 1], [], []>} : vector<2x2048xbf16>, vector<2048x128xbf16>, vector<2x128xf32> -> vector<2x128xf32>
    %7 = arith.addf %3, %6 : vector<2x128xf32>
    %c0_6 = arith.constant 0 : index
    %c0_7 = arith.constant 0 : index
    %8 = vector.load %arg8[%c0_6, %c0_7] : memref<2x128xf32, #tpu.memory_space<vmem>>, vector<2x128xf32>
    tpu.vector_store %arg8[%c0_6, %c0_7], %7 {strides = array<i32>} : memref<2x128xf32, #tpu.memory_space<vmem>>, vector<2x128xf32>,
    %c0_i32_8 = arith.constant 0 : i32
    %9 = arith.cmpi eq, %arg1, %c0_i32_8 : i32
    %10 = arith.extui %9 : i1 to i32
    %c0_i32_9 = arith.constant 0 : i32
    %11 = arith.cmpi ne, %10, %c0_i32_9 : i32
    scf.if %11 {
      %c0_10 = arith.constant 0 : index
      %c0_11 = arith.constant 0 : index
      %12 = vector.load %arg8[%c0_10, %c0_11] : memref<2x128xf32, #tpu.memory_space<vmem>>, vector<2x128xf32>
      %c0_12 = arith.constant 0 : index
      %c0_13 = arith.constant 0 : index
      %13 = vector.load %arg4[%c0_12, %c0_13] : memref<1x128xf32, #tpu.memory_space<vmem>>, vector<1x128xf32>
      %14 = vector.broadcast %13 : vector<1x128xf32> to vector<2x128xf32>
      %15 = arith.addf %12, %14 : vector<2x128xf32>
      %cst_14 = arith.constant 0.000000e+00 : f32
      %16 = vector.broadcast %cst_14 : f32 to vector<2x128xf32>
      %17 = arith.maximumf %15, %16 : vector<2x128xf32>
      %18 = arith.truncf %17 : vector<2x128xf32> to vector<2x128xbf16>
      %c0_15 = arith.constant 0 : index
      %c0_16 = arith.constant 0 : index
      %19 = vector.load %arg5[%c0_15, %c0_16] : memref<128x128xbf16, #tpu.memory_space<vmem>>, vector<128x128xbf16>
      %cst_17 = arith.constant dense<0.000000e+00> : vector<2x128xf32>
      %20 = tpu.matmul %18, %19, %cst_17 {dimension_numbers = #tpu.dot_dimension_numbers<[1], [0], [0], [1], [0, 0, 1, 1], [], []>} : vector<2x128xbf16>, vector<128x128xbf16>, vector<2x128xf32> -> vector<2x128xf32>
      %c0_18 = arith.constant 0 : index
      %c0_19 = arith.constant 0 : index
      %21 = vector.load %arg6[%c0_18, %c0_19] : memref<1x128xf32, #tpu.memory_space<vmem>>, vector<1x128xf32>
      %22 = vector.broadcast %21 : vector<1x128xf32> to vector<2x128xf32>
      %23 = arith.addf %20, %22 : vector<2x128xf32>
      %c0_20 = arith.constant 0 : index
      %c0_21 = arith.constant 0 : index
      %24 = vector.load %arg7[%c0_20, %c0_21] : memref<2x128xf32, #tpu.memory_space<vmem>>, vector<2x128xf32>
      tpu.vector_store %arg7[%c0_20, %c0_21], %23 {strides = array<i32>} : memref<2x128xf32, #tpu.memory_space<vmem>>, vector<2x128xf32>,
    } else {
    }
    return
  }
  func.func @transform_0(%arg0: i32, %arg1: i32) -> (i32, i32) {
    %c0_i32 = arith.constant 0 : i32
    return %arg0, %arg1 : i32, i32
  }
  func.func @transform_1(%arg0: i32, %arg1: i32) -> (i32, i32) {
    %c0_i32 = arith.constant 0 : i32
    %c0_i32_0 = arith.constant 0 : i32
    return %arg1, %c0_i32 : i32, i32
  }
  func.func @transform_2(%arg0: i32, %arg1: i32) -> (i32, i32) {
    %c0_i32 = arith.constant 0 : i32
    %c0_i32_0 = arith.constant 0 : i32
    %c0_i32_1 = arith.constant 0 : i32
    return %c0_i32, %c0_i32_0 : i32, i32
  }
  func.func @transform_3(%arg0: i32, %arg1: i32) -> (i32, i32) {
    %c0_i32 = arith.constant 0 : i32
    %c0_i32_0 = arith.constant 0 : i32
    %c0_i32_1 = arith.constant 0 : i32
    return %c0_i32, %c0_i32_0 : i32, i32
  }
  func.func @transform_4(%arg0: i32, %arg1: i32) -> (i32, i32) {
    %c0_i32 = arith.constant 0 : i32
    %c0_i32_0 = arith.constant 0 : i32
    %c0_i32_1 = arith.constant 0 : i32
    return %c0_i32, %c0_i32_0 : i32, i32
  }
  func.func @transform_5(%arg0: i32, %arg1: i32) -> (i32, i32) {
    %c0_i32 = arith.constant 0 : i32
    %c0_i32_0 = arith.constant 0 : i32
    return %arg0, %c0_i32 : i32, i32
  }
}

</mosaic_0001>

<bundles_post_ra>
// kernel: cnn2d_forward.4
= control target key start
LH: loop header
LB: loop body
LE: loop exit
PB: predicated region body
PF: predicated region fallthrough
CT: control target
= control target key end

     0   :  { %s915_s12 = smov 0   ;;  %s917_s13 = smov 0   ;;  %s1027_s0 = inlined_call_operand.vmem [shape: bf16[2,16,12,20], index: 0, kind: input, shape index: {}]   ;;  %s1028_s1 = inlined_call_operand.vmem [shape: bf16[5,20,128], index: 1, kind: input, shape index: {}]   ;;  %s1029_s2 = inlined_call_operand.vmem [shape: f32[1,128], index: 2, kind: input, shape index: {}]   ;;  %s1030_s3 = inlined_call_operand.vmem [shape: bf16[2,12,12,128], index: 3, kind: output, shape index: {}]  }
   0x1   :  { %s919_s14 = smov 0   ;;  %s921_s15 = smov 0  }
   0x2   :  { %s923_s16 = smov 0  }
   0x3 LB: > { %s22_s17 = sadd.s32 1, %s883_s14  ;;  %s25_s18 = sadd.s32 1, %s887_s15  ;;  %s891_s16 = sphi %s923_s16, %s13_s16   ;;  %s887_s15 = sphi %s921_s15, %s1034_s15   ;;  %s883_s14 = sphi %s919_s14, %s1033_s14   ;;  %s879_s13 = sphi %s917_s13, %s1032_s13   ;;  %s875_s12 = sphi %s915_s12, %s1031_s12  }
   0x4   : > { %p23_p0 = scmp.ge.s32.totalorder %s22_s17, 12  ;;  %p680_p1 = scmp.ge.s32.totalorder %s891_s16, 1 }
   0x5   : > { %p151_p2 = scmp.lt.s32.totalorder %s891_s16, 25 }
   0x6   : > { %s1036_s17 = smov (%p23_p0, %s22_s17), 0  ;;  %s1038_s18 = smov (!%p23_p0, %s25_s18), %s887_s15 }
   0x7   : > { %p152_p3 = pnand %p680_p1, %p151_p2  ;;  %p27_p4 = scmp.ge.s32.totalorder %s1038_s18, 2 }
   0x8   : > { %p179_p5 = scmp.lt.s32.totalorder (!%p152_p3), %s879_s13, 1  ;;  %s737_s4 = sshll.u32 (!%p152_p3), %s875_s12, 3 }
   0x9   : > { %s1040_s18 = smov (%p27_p4, %s1038_s18), 0  ;;  %155 = sbr.rel (%p152_p3) target bundleno = 245 (0xf5), region = 32 }
   0xa   : > { %p186_p6 = scmp.lt.s32.totalorder (!%p152_p3), %s875_s12, 11 }
   0xe   : > { %v838_v0 = vld [vmem:[%s1028_s1 + $0x14] ss:$0 sps:$4 sm:$0x33]   ;;  %v893_v1 = vmov 0.0   ;;  %vm230_vm0 = vcmask 1041408   ;;  %v840_v5 = vld [vmem:[%s1028_s1 + $0xc] sm:$0xff]  }
   0xf   : > { %755 = vmatprep.subr.bf16.mxu0 %v893_v1  ;;  %763 = vmatprep.subr.bf16.mxu1 %v893_v1  ;;  %v839_v2 = vld [vmem:[%s1028_s1 + $0x8] ss:$0 sps:$4 sm:$0x33]   ;;  %v232_v3 = vsel %vm230_vm0, %v838_v0, 0  ;;  %v841_v6 = vld [vmem:[%s1028_s1] sm:$0xff]   ;;  %vm894_vm1 = vmmov 0  }
  0x10   : > { %756 = vmatpush3.bf16.msra.mxu0 %v232_v3  ;;  %v293_v4 = vsel %vm230_vm0, %v839_v2, 0  ;;  %759 = vmatprep.mubr.msk.bf16.mxu0 %vm894_vm1, %v893_v1  ;;  %v844_v7 = vld [vmem:[%s1028_s1 + $0x20] ss:$0 sps:$4 sm:$0x33]   ;;  %s1042_s13 = smov (!%p179_p5, %s879_s13), 1  ;;  %vm226_vm2 = vcmask 162816  }
  0x11   : > { %764 = vmatpush3.bf16.msra.mxu1 %v293_v4  ;;  %757 = vmatprep.subr.bf16.mxu0 %v893_v1  ;;  %v845_v8 = vld [vmem:[%s1028_s1 + $0x2c] ss:$0 sps:$4 sm:$0x33]   ;;  %s736_s5 = sshll.u32 %s1042_s13, 7  ;;  %v364_v9 = vsel %vm230_vm0, %v844_v7, 0  ;;  %v846_v14 = vld [vmem:[%s1028_s1 + $0x18] sm:$0xff]  }
  0x12   : > { %765 = vmatprep.subr.bf16.mxu1 %v893_v1  ;;  %767 = vmatprep.mubr.msk.bf16.mxu1 %vm894_vm1, %v893_v1  ;;  %s183_s8 = scalar_lea.vmem %s1027_s0, %s736_s5  ;;  %v437_v10 = vsel %vm230_vm0, %v845_v8, 0  ;;  %v850_v13 = vld [vmem:[%s1028_s1 + $0x38] ss:$0 sps:$4 sm:$0x33]   ;;  %v847_v15 = vld [vmem:[%s1028_s1 + $0x24] sm:$0xff]   ;;  %v851_v19 = vld [vmem:[%s1028_s1 + $0x30] sm:$0xff]  }
  0x13   : > { %s196_s9 = scalar_lea.vmem %s183_s8, %s737_s4  ;;  %v510_v18 = vsel %vm230_vm0, %v850_v13, 0  ;;  %s1044_s12 = smov (!%p186_p6, %s875_s12), 11  ;;  %v731_v43 = vld [vmem:[%s1029_s2] ss:$0 sm:$0xff] }
  0x14   : > { %758 = vmatpush3.bf16.msra.mxu0 %v840_v5  ;;  %v842_v11 = vld [vmem:[%s196_s9 + $0x8] sm:$0x3f]   ;;  %v843_v12 = vld [vmem:[%s196_s9] sm:$0x3f]   ;;  %v848_v16 = vld [vmem:[%s196_s9 + $0x10] sm:$0x3f]  }
  0x15   : > { %766 = vmatpush3.bf16.msra.mxu1 %v841_v6  ;;  %771 = vmatprep.subr.bf16.mxu0 %v893_v1  ;;  %v849_v17 = vld [vmem:[%s196_s9 + $0x18] sm:$0x3f]   ;;  %v852_v20 = vld [vmem:[%s196_s9 + $0x20] sm:$0x3f]   ;;  %s795_s25 = smul.u32 24, %s1042_s13  ;;  %s683_s26 = sshll.u32 %s1044_s12, 1 }
  0x16   : > { %779 = vmatprep.subr.bf16.mxu1 %v893_v1 }
  0x17   : > { %760 = vmatmul.mubr.msk.bf16.vlgmr.msra.gmra.mxu0 %vm226_vm2, %v842_v11  ;;  %s190_s27 = sadd.s32 %s795_s25, %s683_s26 }
  0x18   : > { %768 = vmatmul.mubr.msk.bf16.vlgmr.msra.gmra.mxu1 %vm226_vm2, %v843_v12  ;;  %772 = vmatpush3.bf16.msra.mxu0 %v364_v9  ;;  %s684_s30 = sshll.u32 %s190_s27, 2 }
  0x19   : > { %780 = vmatpush3.bf16.msra.mxu1 %v437_v10  ;;  %773 = vmatprep.subr.bf16.mxu0 %v893_v1  ;;  %s192_s4 = scalar_lea.vmem %s1030_s3, %s684_s30 }
  0x1a   : > { %781 = vmatprep.subr.bf16.mxu1 %v893_v1  ;;  %775 = vmatprep.mubr.msk.bf16.mxu0 %vm894_vm1, %v893_v1 }
  0x1b   : > { %783 = vmatprep.mubr.msk.bf16.mxu1 %vm894_vm1, %v893_v1 }
  0x1c   : > { %774 = vmatpush3.bf16.msra.mxu0 %v846_v14 }
  0x1d   : > { %782 = vmatpush3.bf16.msra.mxu1 %v847_v15  ;;  %787 = vmatprep.subr.bf16.mxu0 %v893_v1 }
  0x1f   : > { %776 = vmatmul.mubr.msk.bf16.vlgmr.msra.gmra.mxu0 %vm226_vm2, %v848_v16 }
  0x20   : > { %784 = vmatmul.mubr.msk.bf16.vlgmr.msra.gmra.mxu1 %vm226_vm2, %v849_v17  ;;  %788 = vmatpush3.bf16.msra.mxu0 %v510_v18 }
  0x21   : > { %789 = vmatprep.subr.bf16.mxu0 %v893_v1  ;;  %791 = vmatprep.mubr.msk.bf16.mxu0 %vm894_vm1, %v893_v1 }
  0x24   : > { %790 = vmatpush3.bf16.msra.mxu0 %v851_v19 }
  0x27   : > { %792 = vmatmul.mubr.msk.bf16.vlgmr.msra.gmra.mxu0 %vm226_vm2, %v852_v20 }
  0xd7   : > { %v268_v21 = vpop.f32.mrf.mxu0 }
  0xd8   : > { %v329_v22 = vpop.f32.mrf.mxu1 }
  0xd9   : > { %v761_v23 = vpop.f32.mrf.mxu0  ;;  %v330_v30 = vadd.f32 %v329_v22, %v268_v21 }
  0xda   : > { %v769_v24 = vpop.f32.mrf.mxu1 }
  0xdb   : > { %v271_v25 = vpop.f32.mrf.mxu0 }
  0xdc   : > { %v332_v26 = vpop.f32.mrf.mxu1 }
  0xdd   : > { %v762_v27 = vpop.f32.mrf.mxu0  ;;  %v333_v36 = vadd.f32 %v332_v26, %v271_v25 }
  0xde   : > { %v770_v28 = vpop.f32.mrf.mxu1 }
  0xdf   : > { %v400_v29 = vpop.f32.mrf.mxu0 }
  0xe0   : > { %v473_v31 = vpop.f32.mrf.mxu1  ;;  %v407_v33 = vadd.f32 %v400_v29, %v330_v30 }
  0xe1   : > { %v777_v32 = vpop.f32.mrf.mxu0 }
  0xe2   : > { %v785_v34 = vpop.f32.mrf.mxu1  ;;  %v480_v39 = vadd.f32 %v473_v31, %v407_v33 }
  0xe3   : > { %v403_v35 = vpop.f32.mrf.mxu0 }
  0xe4   : > { %v476_v37 = vpop.f32.mrf.mxu1  ;;  %v408_v40 = vadd.f32 %v403_v35, %v333_v36 }
  0xe5   : > { %v778_v38 = vpop.f32.mrf.mxu0 }
  0xe6   : > { %v786_v41 = vpop.f32.mrf.mxu1  ;;  %v481_v46 = vadd.f32 %v476_v37, %v408_v40 }
  0xe7   : > { %v546_v42 = vpop.f32.mrf.mxu0 }
  0xe8   : > { %v553_v44 = vadd.f32 %v546_v42, %v480_v39 }
  0xe9   : > { %v793_v45 = vpop.f32.mrf.mxu0 }
  0xea   : > { %v562_v47 = vadd.f32 %v731_v43, %v553_v44 }
  0xeb   : > { %v549_v48 = vpop.f32.mrf.mxu0 }
  0xec   : > { %v564_v49 = vmax.f32 %v562_v47, 0.0  ;;  %v554_v50 = vadd.f32 %v549_v48, %v481_v46 }
  0xed   : > { %v794_v51 = vpop.f32.mrf.mxu0 }
  0xee   : > { %v738_v52 = vpack.c.bf16 %v564_v49, %v564_v49  ;;  %v563_v53 = vadd.f32 %v731_v43, %v554_v50 }
  0xf0   : > { %574 = vst [vmem:[%s192_s4] sm:$0xf] %v738_v52  ;;  %v565_v54 = vmax.f32 %v563_v53, 0.0 }
  0xf2   : > { %v739_v55 = vpack.c.bf16 %v565_v54, %v565_v54 }
  0xf4   : > { %575 = vst [vmem:[%s192_s4 + $0x4] sm:$0x3] %v739_v55 }
  0xf5 PF: > { %s13_s16 = sadd.s32 1, %s891_s16   ;;  %s1031_s12 = smov %s883_s14 }
  0xf6   : > { %p10_p7 = scmp.ge.s32.totalorder %s13_s16, 26   ;;  %s1032_s13 = smov %s887_s15 }
  0xf7   : > { %s1033_s14 = smov %s1036_s17  ;;  %s1034_s15 = smov %s1040_s18 }
  0xf8   :  { %12 = sbr.rel (!%p10_p7) target bundleno = 3 (0x3), region = 71 }

// kernel: cnn2d_forward.5
= control target key start
LH: loop header
LB: loop body
LE: loop exit
PB: predicated region body
PF: predicated region fallthrough
CT: control target
= control target key end

     0   :  { %s1776_s12 = smov 0   ;;  %s1778_s13 = smov 0   ;;  %s2100_s0 = inlined_call_operand.vmem [shape: bf16[2,12,8,250], index: 0, kind: input, shape index: {}]   ;;  %s2101_s1 = inlined_call_operand.vmem [shape: bf16[5,250,128], index: 1, kind: input, shape index: {}]   ;;  %s2102_s2 = inlined_call_operand.vmem [shape: f32[1,128], index: 2, kind: input, shape index: {}]   ;;  %s2103_s3 = inlined_call_operand.vmem [shape: bf16[2,8,8,128], index: 3, kind: output, shape index: {}]  }
   0x1   :  { %s1780_s14 = smov 0   ;;  %s1782_s15 = smov 0  }
   0x2   :  { %s1784_s16 = smov 0  }
   0x3 LB: > { %s22_s17 = sadd.s32 1, %s1746_s14  ;;  %s25_s18 = sadd.s32 1, %s1750_s15  ;;  %s1754_s16 = sphi %s1784_s16, %s13_s16   ;;  %s1750_s15 = sphi %s1782_s15, %s2107_s15   ;;  %s1746_s14 = sphi %s1780_s14, %s2106_s14   ;;  %s1742_s13 = sphi %s1778_s13, %s2105_s13   ;;  %s1738_s12 = sphi %s1776_s12, %s2104_s12  }
   0x4   : > { %p23_p0 = scmp.ge.s32.totalorder %s22_s17, 8  ;;  %p1229_p1 = scmp.ge.s32.totalorder %s1754_s16, 1 }
   0x5   : > { %p151_p2 = scmp.lt.s32.totalorder %s1754_s16, 17 }
   0x6   : > { %s2109_s17 = smov (%p23_p0, %s22_s17), 0  ;;  %s2111_s18 = smov (!%p23_p0, %s25_s18), %s1750_s15 }
   0x7   : > { %p152_p3 = pnand %p1229_p1, %p151_p2  ;;  %p27_p4 = scmp.ge.s32.totalorder %s2111_s18, 2 }
   0x8   : > { %p178_p5 = scmp.lt.s32.totalorder (!%p152_p3), %s1742_s13, 1  ;;  %s1469_s10 = sshll.u32 (!%p152_p3), %s1738_s12, 3 }
   0x9   : > { %s2113_s18 = smov (%p27_p4, %s2111_s18), 0  ;;  %155 = sbr.rel (%p152_p3) target bundleno = 317 (0x13d), region = 32 }
   0xa   : > { %p185_p6 = scmp.lt.s32.totalorder (!%p152_p3), %s1738_s12, 7 }
   0xe   : > { %v1626_v0 = vld [vmem:[%s2101_s1 + $0xf8] sm:$0x1f]   ;;  %vm371_vm0 = vcmask 1044480   ;;  %v1630_v4 = vld [vmem:[%s2101_s1 + $0xf0] sm:$0xff]   ;;  %v1634_v8 = vld [vmem:[%s2101_s1 + $0xe8] sm:$0xff]   ;;  %s2115_s13 = smov (!%p178_p5, %s1742_s13), 1 }
   0xf   : > { %v1628_v1 = vld [vmem:[%s2101_s1 + $0xb8] sm:$0xff]   ;;  %1580 = vmatprep.subr.msk.bf16.mxu0 %vm371_vm0, %v1626_v0  ;;  %v1631_v5 = vld [vmem:[%s2101_s1 + $0x70] sm:$0xff]   ;;  %v1635_v9 = vld [vmem:[%s2101_s1 + $0x68] sm:$0xff]   ;;  %s1585_s25 = smul.u32 96, %s2115_s13  ;;  %vm367_vm1 = vcmask 998400   ;;  %s2117_s12 = smov (!%p185_p6, %s1738_s12), 7 }
  0x10   : > { %v1627_v2 = vld [vmem:[%s2101_s1 + $0x78] sm:$0x1f]   ;;  %1471 = vmatpush3.bf16.msra.mxu0 %v1628_v1  ;;  %v1632_v6 = vld [vmem:[%s2101_s1 + $0xb0] sm:$0xff]   ;;  %v1636_v10 = vld [vmem:[%s2101_s1 + $0xa8] sm:$0xff]   ;;  %s1231_s29 = sshll.u32 %s2115_s13, 3 }
  0x11   : > { %v1629_v3 = vld [vmem:[%s2101_s1 + $0x38] sm:$0xff]   ;;  %1581 = vmatprep.subr.msk.bf16.mxu1 %vm371_vm0, %v1627_v2  ;;  %1472 = vmatprep.subr.bf16.mxu0 %v1630_v4  ;;  %v1633_v7 = vld [vmem:[%s2101_s1 + $0x30] sm:$0xff]   ;;  %v1637_v11 = vld [vmem:[%s2101_s1 + $0x28] sm:$0xff]   ;;  %s182_s9 = scalar_lea.vmem %s2100_s0, %s1585_s25  ;;  %s188_s30 = sadd.s32 %s1231_s29, %s2117_s12 }
  0x12   : > { %1493 = vmatpush3.bf16.msra.mxu1 %v1629_v3  ;;  %v1638_v12 = vld [vmem:[%s2101_s1 + $0xe0] sm:$0xff]   ;;  %v1642_v16 = vld [vmem:[%s2101_s1 + $0xd8] sm:$0xff]   ;;  %v1646_v20 = vld [vmem:[%s2101_s1 + $0xd0] sm:$0xff]   ;;  %s1911_s24 = scalar_lea.vmem %s182_s9, %s1469_s10  ;;  %s1232_s6 = sshll.u32 %s188_s30, 2 }
  0x13   : > { %1494 = vmatprep.subr.bf16.mxu1 %v1631_v5  ;;  %v1639_v13 = vld [vmem:[%s2101_s1 + $0x60] sm:$0xff]   ;;  %v1643_v17 = vld [vmem:[%s2101_s1 + $0x58] sm:$0xff]   ;;  %v1647_v21 = vld [vmem:[%s2101_s1 + $0x50] sm:$0xff]   ;;  %s190_s9 = scalar_lea.vmem %s2103_s3, %s1232_s6 }
  0x14   : > { %1473 = vmatpush3.bf16.msra.mxu0 %v1632_v6  ;;  %v1640_v14 = vld [vmem:[%s2101_s1 + $0xa0] sm:$0xff]   ;;  %v1644_v18 = vld [vmem:[%s2101_s1 + $0x98] sm:$0xff]   ;;  %v1648_v22 = vld [vmem:[%s2101_s1 + $0x90] sm:$0xff]  }
  0x15   : > { %1474 = vmatprep.subr.bf16.mxu0 %v1634_v8  ;;  %v1641_v15 = vld [vmem:[%s2101_s1 + $0x20] sm:$0xff]   ;;  %v1645_v19 = vld [vmem:[%s2101_s1 + $0x18] sm:$0xff]   ;;  %v1649_v23 = vld [vmem:[%s2101_s1 + $0x10] sm:$0xff]  }
  0x16   : > { %1495 = vmatpush3.bf16.msra.mxu1 %v1633_v7  ;;  %v1650_v24 = vld [vmem:[%s2101_s1 + $0xc8] sm:$0xff]   ;;  %v1654_v28 = vld [vmem:[%s2101_s1 + $0xc0] sm:$0xff]   ;;  %v1662_v38 = vld [vmem:[%s2101_s1 + $0x178] sm:$0x1f]  }
  0x17   : > { %1496 = vmatprep.subr.bf16.mxu1 %v1635_v9  ;;  %v1651_v25 = vld [vmem:[%s2101_s1 + $0x48] sm:$0xff]   ;;  %v1655_v29 = vld [vmem:[%s2101_s1 + $0x40] sm:$0xff]   ;;  %v1663_v39 = vld [vmem:[%s2101_s1 + $0x138] sm:$0xff]  }
  0x18   : > { %1475 = vmatpush3.bf16.msra.mxu0 %v1636_v10  ;;  %v1652_v26 = vld [vmem:[%s2101_s1 + $0x88] sm:$0xff]   ;;  %v1656_v30 = vld [vmem:[%s2101_s1 + $0x80] sm:$0xff]   ;;  %v1664_v40 = vld [vmem:[%s2101_s1 + $0x1f8] sm:$0x1f]  }
  0x19   : > { %1476 = vmatprep.subr.bf16.mxu0 %v1638_v12  ;;  %v1653_v27 = vld [vmem:[%s2101_s1 + $0x8] sm:$0xff]   ;;  %v1657_v31 = vld [vmem:[%s2101_s1] sm:$0xff]   ;;  %v1665_v41 = vld [vmem:[%s2101_s1 + $0x1b8] sm:$0xff]  }
  0x1a   : > { %1497 = vmatpush3.bf16.msra.mxu1 %v1637_v11  ;;  %v1236_v32 = vld [vmem:[%s1911_s24 + $0x8] sm:$0xff]  ;;  %v195_v33 = vld [vmem:[%s1911_s24] sm:$0xff]  ;;  %v1666_v42 = vld [vmem:[%s2101_s1 + $0x170] sm:$0xff]  }
  0x1b   : > { %1498 = vmatprep.subr.bf16.mxu1 %v1639_v13  ;;  %v1269_v34 = vcombine.low %v1236_v32, %v1236_v32  ;;  %v1270_v35 = vcombine.high %v1236_v32, %v1236_v32  ;;  %v1288_v36 = vcombine.low %v195_v33, %v195_v33  ;;  %v1289_v37 = vcombine.high %v195_v33, %v195_v33  ;;  %v1667_v43 = vld [vmem:[%s2101_s1 + $0x130] sm:$0xff]   ;;  %v1670_v46 = vld [vmem:[%s2101_s1 + $0x168] sm:$0xff]   ;;  %v1674_v50 = vld [vmem:[%s2101_s1 + $0x160] sm:$0xff]  }
  0x1c   : > { %1477 = vmatpush3.bf16.msra.mxu0 %v1640_v14  ;;  %v1668_v44 = vld [vmem:[%s2101_s1 + $0x1f0] sm:$0xff]   ;;  %v1671_v47 = vld [vmem:[%s2101_s1 + $0x128] sm:$0xff]   ;;  %v1675_v51 = vld [vmem:[%s2101_s1 + $0x120] sm:$0xff]  }
  0x1d   : > { %1478 = vmatprep.subr.bf16.mxu0 %v1642_v16  ;;  %1287 = vmatprep.mubr.msk.bf16.mxu0 %vm367_vm1, %v1270_v35  ;;  %v1669_v45 = vld [vmem:[%s2101_s1 + $0x1b0] sm:$0xff]   ;;  %v1672_v48 = vld [vmem:[%s2101_s1 + $0x1e8] sm:$0xff]   ;;  %v1676_v52 = vld [vmem:[%s2101_s1 + $0x1e0] sm:$0xff]  }
  0x1e   : > { %1499 = vmatpush3.bf16.msra.mxu1 %v1641_v15  ;;  %1306 = vmatprep.mubr.msk.bf16.mxu1 %vm367_vm1, %v1289_v37  ;;  %v1673_v49 = vld [vmem:[%s2101_s1 + $0x1a8] sm:$0xff]   ;;  %v1677_v53 = vld [vmem:[%s2101_s1 + $0x1a0] sm:$0xff]   ;;  %v1678_v54 = vld [vmem:[%s2101_s1 + $0x158] sm:$0xff]  }
  0x1f   : > { %1500 = vmatprep.subr.bf16.mxu1 %v1643_v17  ;;  %v1679_v55 = vld [vmem:[%s2101_s1 + $0x118] sm:$0xff]   ;;  %v1682_v58 = vld [vmem:[%s2101_s1 + $0x150] sm:$0xff]   ;;  %v1686_v62 = vld [vmem:[%s2101_s1 + $0x148] sm:$0xff]  }
  0x20   : > { %1479 = vmatpush3.bf16.msra.mxu0 %v1644_v18  ;;  %v1680_v56 = vld [vmem:[%s2101_s1 + $0x1d8] sm:$0xff]   ;;  %v1683_v59 = vld [vmem:[%s2101_s1 + $0x110] sm:$0xff]   ;;  %v1687_v63 = vld [vmem:[%s2101_s1 + $0x108] sm:$0xff]  }
  0x21   : > { %1480 = vmatprep.subr.bf16.mxu0 %v1646_v20  ;;  %v1681_v57 = vld [vmem:[%s2101_s1 + $0x198] sm:$0xff]   ;;  %v1684_v60 = vld [vmem:[%s2101_s1 + $0x1d0] sm:$0xff]   ;;  %v1688_v0 = vld [vmem:[%s2101_s1 + $0x1c8] sm:$0xff]  }
  0x22   : > { %1501 = vmatpush3.bf16.msra.mxu1 %v1645_v19  ;;  %v1685_v61 = vld [vmem:[%s2101_s1 + $0x190] sm:$0xff]   ;;  %v1689_v1 = vld [vmem:[%s2101_s1 + $0x188] sm:$0xff]   ;;  %v1690_v2 = vld [vmem:[%s2101_s1 + $0x140] sm:$0xff]  }
  0x23   : > { %1502 = vmatprep.subr.bf16.mxu1 %v1647_v21  ;;  %v1691_v3 = vld [vmem:[%s2101_s1 + $0x100] sm:$0xff]   ;;  %v1308_v5 = vld [vmem:[%s1911_s24 + $0x10] sm:$0xff]  ;;  %v1696_v9 = vld [vmem:[%s2101_s1 + $0x278] sm:$0x1f]  }
  0x24   : > { %1481 = vmatpush3.bf16.msra.mxu0 %v1648_v22  ;;  %v1692_v4 = vld [vmem:[%s2101_s1 + $0x1c0] sm:$0xff]   ;;  %v1342_v6 = vcombine.high %v1308_v5, %v1308_v5  ;;  %v1341_v8 = vcombine.low %v1308_v5, %v1308_v5  ;;  %v1361_v10 = vld [vmem:[%s1911_s24 + $0x18] sm:$0xff]  ;;  %v1700_v14 = vld [vmem:[%s2101_s1 + $0x270] sm:$0xff]  }
  0x25   : > { %1482 = vmatprep.subr.bf16.mxu0 %v1650_v24  ;;  %v1694_v7 = vld [vmem:[%s2101_s1 + $0x180] sm:$0xff]   ;;  %v1395_v11 = vcombine.high %v1361_v10, %v1361_v10  ;;  %v1698_v12 = vld [vmem:[%s2101_s1 + $0x238] sm:$0xff]   ;;  %v1394_v13 = vcombine.low %v1361_v10, %v1361_v10  ;;  %v1701_v15 = vld [vmem:[%s2101_s1 + $0x230] sm:$0xff]  }
  0x26   : > { %1503 = vmatpush3.bf16.msra.mxu1 %v1649_v23  ;;  %v1702_v16 = vld [vmem:[%s2101_s1 + $0x268] sm:$0xff]   ;;  %v1704_v18 = vld [vmem:[%s2101_s1 + $0x260] sm:$0xff]   ;;  %v1706_v20 = vld [vmem:[%s2101_s1 + $0x258] sm:$0xff]  }
  0x27   : > { %1504 = vmatprep.subr.bf16.mxu1 %v1651_v25  ;;  %v1703_v17 = vld [vmem:[%s2101_s1 + $0x228] sm:$0xff]   ;;  %v1705_v19 = vld [vmem:[%s2101_s1 + $0x220] sm:$0xff]   ;;  %v1707_v22 = vld [vmem:[%s2101_s1 + $0x218] sm:$0xff]  }
  0x28   : > { %1483 = vmatpush3.bf16.msra.mxu0 %v1652_v26  ;;  %v1414_v21 = vld [vmem:[%s1911_s24 + $0x20] sm:$0xff]  ;;  %v1708_v24 = vld [vmem:[%s2101_s1 + $0x250] sm:$0xff]   ;;  %v1710_v26 = vld [vmem:[%s2101_s1 + $0x248] sm:$0xff]  }
  0x29   : > { %1484 = vmatprep.subr.bf16.mxu0 %v1654_v28  ;;  %v1448_v23 = vcombine.high %v1414_v21, %v1414_v21  ;;  %v1709_v25 = vld [vmem:[%s2101_s1 + $0x210] sm:$0xff]   ;;  %v1712_v28 = vld [vmem:[%s2101_s1 + $0x240] sm:$0xff]  }
  0x2a   : > { %1505 = vmatpush3.bf16.msra.mxu1 %v1653_v27  ;;  %v1711_v27 = vld [vmem:[%s2101_s1 + $0x208] sm:$0xff]  }
  0x2b   : > { %1506 = vmatprep.subr.bf16.mxu1 %v1655_v29  ;;  %v1713_v29 = vld [vmem:[%s2101_s1 + $0x200] sm:$0xff]  }
  0x2c   : > { %1485 = vmatpush3.bf16.msra.mxu0 %v1656_v30  ;;  %v1447_v30 = vcombine.low %v1414_v21, %v1414_v21 }
  0x2d   : > { %1582 = vmatprep.subr.msk.bf16.mxu0 %vm371_vm0, %v1662_v38 }
  0x2e   : > { %1507 = vmatpush3.bf16.msra.mxu1 %v1657_v31 }
  0x2f   : > { %408 = vmatmul.mubr.bf16.vlgmr.msra.gmra.mxu0 %v1269_v34  ;;  %1583 = vmatprep.subr.msk.bf16.mxu1 %vm371_vm0, %v1664_v40 }
  0x30   : > { %1515 = vmatpush3.bf16.msra.mxu0 %v1663_v39  ;;  %1359 = vmatprep.mubr.msk.bf16.mxu0 %vm367_vm1, %v1342_v6 }
  0x31   : > { %555 = vmatmul.mubr.bf16.vlgmr.msra.gmra.mxu1 %v1288_v36  ;;  %1516 = vmatprep.subr.bf16.mxu0 %v1666_v42 }
  0x32   : > { %1537 = vmatpush3.bf16.msra.mxu1 %v1665_v41  ;;  %1412 = vmatprep.mubr.msk.bf16.mxu1 %vm367_vm1, %v1395_v11 }
  0x33   : > { %1538 = vmatprep.subr.bf16.mxu1 %v1668_v44 }
  0x34   : > { %1517 = vmatpush3.bf16.msra.mxu0 %v1667_v43 }
  0x35   : > { %1518 = vmatprep.subr.bf16.mxu0 %v1670_v46 }
  0x36   : > { %1539 = vmatpush3.bf16.msra.mxu1 %v1669_v45 }
  0x37   : > { %1540 = vmatprep.subr.bf16.mxu1 %v1672_v48 }
  0x38   : > { %1519 = vmatpush3.bf16.msra.mxu0 %v1671_v47 }
  0x39   : > { %1520 = vmatprep.subr.bf16.mxu0 %v1674_v50 }
  0x3a   : > { %1541 = vmatpush3.bf16.msra.mxu1 %v1673_v49 }
  0x3b   : > { %1542 = vmatprep.subr.bf16.mxu1 %v1676_v52 }
  0x3c   : > { %1521 = vmatpush3.bf16.msra.mxu0 %v1675_v51 }
  0x3d   : > { %1522 = vmatprep.subr.bf16.mxu0 %v1678_v54 }
  0x3e   : > { %1543 = vmatpush3.bf16.msra.mxu1 %v1677_v53 }
  0x3f   : > { %1544 = vmatprep.subr.bf16.mxu1 %v1680_v56 }
  0x40   : > { %1523 = vmatpush3.bf16.msra.mxu0 %v1679_v55 }
  0x41   : > { %1524 = vmatprep.subr.bf16.mxu0 %v1682_v58 }
  0x42   : > { %1545 = vmatpush3.bf16.msra.mxu1 %v1681_v57  ;;  %v1466_v57 = vld [vmem:[%s2102_s2] ss:$0 sm:$0xff] }
  0x43   : > { %1546 = vmatprep.subr.bf16.mxu1 %v1684_v60 }
  0x44   : > { %1525 = vmatpush3.bf16.msra.mxu0 %v1683_v59 }
  0x45   : > { %1526 = vmatprep.subr.bf16.mxu0 %v1686_v62 }
  0x46   : > { %1547 = vmatpush3.bf16.msra.mxu1 %v1685_v61 }
  0x47   : > { %1548 = vmatprep.subr.bf16.mxu1 %v1688_v0 }
  0x48   : > { %1527 = vmatpush3.bf16.msra.mxu0 %v1687_v63 }
  0x49   : > { %1528 = vmatprep.subr.bf16.mxu0 %v1690_v2 }
  0x4a   : > { %1549 = vmatpush3.bf16.msra.mxu1 %v1689_v1 }
  0x4b   : > { %1550 = vmatprep.subr.bf16.mxu1 %v1692_v4 }
  0x4c   : > { %1529 = vmatpush3.bf16.msra.mxu0 %v1691_v3 }
  0x4d   : > { %1584 = vmatprep.subr.msk.bf16.mxu0 %vm371_vm0, %v1696_v9 }
  0x4e   : > { %1551 = vmatpush3.bf16.msra.mxu1 %v1694_v7 }
  0x4f   : > { %740 = vmatmul.mubr.bf16.vlgmr.msra.gmra.mxu0 %v1341_v8 }
  0x50   : > { %1559 = vmatpush3.bf16.msra.mxu0 %v1698_v12  ;;  %1465 = vmatprep.mubr.msk.bf16.mxu0 %vm367_vm1, %v1448_v23 }
  0x51   : > { %926 = vmatmul.mubr.bf16.vlgmr.msra.gmra.mxu1 %v1394_v13  ;;  %1560 = vmatprep.subr.bf16.mxu0 %v1700_v14 }
  0x54   : > { %1561 = vmatpush3.bf16.msra.mxu0 %v1701_v15 }
  0x55   : > { %1562 = vmatprep.subr.bf16.mxu0 %v1702_v16 }
  0x58   : > { %1563 = vmatpush3.bf16.msra.mxu0 %v1703_v17 }
  0x59   : > { %1564 = vmatprep.subr.bf16.mxu0 %v1704_v18 }
  0x5c   : > { %1565 = vmatpush3.bf16.msra.mxu0 %v1705_v19 }
  0x5d   : > { %1566 = vmatprep.subr.bf16.mxu0 %v1706_v20 }
  0x60   : > { %1567 = vmatpush3.bf16.msra.mxu0 %v1707_v22 }
  0x61   : > { %1568 = vmatprep.subr.bf16.mxu0 %v1708_v24 }
  0x64   : > { %1569 = vmatpush3.bf16.msra.mxu0 %v1709_v25 }
  0x65   : > { %1570 = vmatprep.subr.bf16.mxu0 %v1710_v26 }
  0x68   : > { %1571 = vmatpush3.bf16.msra.mxu0 %v1711_v27 }
  0x69   : > { %1572 = vmatprep.subr.bf16.mxu0 %v1712_v28 }
  0x6c   : > { %1573 = vmatpush3.bf16.msra.mxu0 %v1713_v29 }
  0x6f   : > { %1112 = vmatmul.mubr.bf16.vlgmr.msra.gmra.mxu0 %v1447_v30 }
  0xef   : > { %v1486_v31 = vpop.f32.mrf.mxu0 }
  0xf1   : > { %v1508_v32 = vpop.f32.mrf.mxu1  ;;  %v1487_v33 = vpop.f32.mrf.mxu0 }
  0xf2   : > { %v1488_v47 = vadd.f32 %v1487_v33, %v1486_v31 }
  0xf3   : > { %v1509_v34 = vpop.f32.mrf.mxu1  ;;  %v1489_v35 = vpop.f32.mrf.mxu0 }
  0xf4   : > { %v1510_v48 = vadd.f32 %v1509_v34, %v1508_v32 }
  0xf5   : > { %v1511_v36 = vpop.f32.mrf.mxu1  ;;  %v1490_v37 = vpop.f32.mrf.mxu0 }
  0xf6   : > { %v557_v50 = vadd.f32 %v1510_v48, %v1488_v47 }
  0xf7   : > { %v1512_v38 = vpop.f32.mrf.mxu1 }
 0x10f   : > { %v1530_v39 = vpop.f32.mrf.mxu0 }
 0x111   : > { %v1552_v40 = vpop.f32.mrf.mxu1  ;;  %v1531_v41 = vpop.f32.mrf.mxu0 }
 0x112   : > { %v1532_v49 = vadd.f32 %v1531_v41, %v1530_v39 }
 0x113   : > { %v1553_v42 = vpop.f32.mrf.mxu1  ;;  %v1533_v43 = vpop.f32.mrf.mxu0 }
 0x114   : > { %v747_v51 = vadd.f32 %v1532_v49, %v557_v50  ;;  %v1554_v52 = vadd.f32 %v1553_v42, %v1552_v40 }
 0x115   : > { %v1555_v44 = vpop.f32.mrf.mxu1  ;;  %v1534_v45 = vpop.f32.mrf.mxu0 }
 0x116   : > { %v933_v55 = vadd.f32 %v1554_v52, %v747_v51 }
 0x117   : > { %v1556_v46 = vpop.f32.mrf.mxu1 }
 0x12f   : > { %v1574_v53 = vpop.f32.mrf.mxu0 }
 0x131   : > { %v1575_v54 = vpop.f32.mrf.mxu0 }
 0x132   : > { %v1576_v56 = vadd.f32 %v1575_v54, %v1574_v53 }
 0x133   : > { %v1577_v58 = vpop.f32.mrf.mxu0 }
 0x134   : > { %v1119_v59 = vadd.f32 %v1576_v56, %v933_v55 }
 0x135   : > { %v1578_v60 = vpop.f32.mrf.mxu0 }
 0x136   : > { %v1127_v61 = vadd.f32 %v1466_v57, %v1119_v59 }
 0x138   : > { %v1128_v62 = vmax.f32 %v1127_v61, 0.0 }
 0x13a   : > { %v1129_v63 = vpack.c.bf16 %v1128_v62, %v1128_v62 }
 0x13c   : > { %1130 = vst [vmem:[%s190_s9] sm:$0xf] %v1129_v63 }
 0x13d PF: > { %s13_s16 = sadd.s32 1, %s1754_s16   ;;  %s2104_s12 = smov %s1746_s14 }
 0x13e   : > { %p10_p7 = scmp.ge.s32.totalorder %s13_s16, 18   ;;  %s2105_s13 = smov %s1750_s15 }
 0x13f   : > { %s2106_s14 = smov %s2109_s17  ;;  %s2107_s15 = smov %s2113_s18 }
 0x140   :  { %12 = sbr.rel (!%p10_p7) target bundleno = 3 (0x3), region = 71 }

// kernel: cnn2d_forward.6
= control target key start
LH: loop header
LB: loop body
LE: loop exit
PB: predicated region body
PF: predicated region fallthrough
CT: control target
= control target key end

     0   :  { %s358_s6 = smov 0   ;;  %s360_s7 = smov 0   ;;  %s409_s0 = inlined_call_operand.vmem [shape: bf16[2,8,4,256], index: 0, kind: input, shape index: {}]   ;;  %s410_s1 = inlined_call_operand.vmem [shape: bf16[2,4,4,128], index: 1, kind: output, shape index: {}]  }
   0x1   :  { %s362_s8 = smov 0   ;;  %s364_s9 = smov 0  }
   0x2   :  { %s366_s10 = smov 0  }
   0x3 LB: > { %s20_s11 = sadd.s32 1, %s338_s8  ;;  %s23_s12 = sadd.s32 1, %s342_s9  ;;  %s346_s10 = sphi %s366_s10, %s11_s10   ;;  %s342_s9 = sphi %s364_s9, %s414_s9   ;;  %s338_s8 = sphi %s362_s8, %s413_s8   ;;  %s334_s7 = sphi %s360_s7, %s412_s7   ;;  %s330_s6 = sphi %s358_s6, %s411_s6  }
   0x4   : > { %p21_p0 = scmp.ge.s32.totalorder %s20_s11, 4  ;;  %p258_p1 = scmp.ge.s32.totalorder %s346_s10, 1 }
   0x5   : > { %p109_p2 = scmp.lt.s32.totalorder %s346_s10, 9 }
   0x6   : > { %s416_s11 = smov (%p21_p0, %s20_s11), 0  ;;  %s418_s12 = smov (!%p21_p0, %s23_s12), %s342_s9 }
   0x7   : > { %p110_p3 = pnand %p258_p1, %p109_p2  ;;  %p25_p4 = scmp.ge.s32.totalorder %s418_s12, 2 }
   0x8   : > { %s259_s13 = sshll.u32 (!%p110_p3), %s330_s6, 1  ;;  %p138_p5 = scmp.lt.s32.totalorder (!%p110_p3), %s334_s7, 1 }
   0x9   : > { %s420_s12 = smov (%p25_p4, %s418_s12), 0  ;;  %113 = sbr.rel (%p110_p3) target bundleno = 27 (0x1b), region = 24 }
   0xa   : > { %p140_p6 = scmp.lt.s32.totalorder (!%p110_p3), %s259_s13, 7  ;;  %p150_p7 = scmp.lt.s32.totalorder (!%p110_p3), %s330_s6, 3 }
   0xe   : > { %s422_s7 = smov (!%p138_p5, %s334_s7), 1  ;;  %s424_s13 = smov (!%p140_p6, %s259_s13), 7 }
   0xf   : > { %s261_s14 = sshll.u32 %s422_s7, 4  ;;  %s260_s15 = sshll.u32 %s424_s13, 1 }
  0x10   : > { %s144_s16 = sadd.s32 %s261_s14, %s260_s15  ;;  %s263_s21 = sshll.u32 %s422_s7, 2 }
  0x11   : > { %s262_s17 = sshll.u32 %s144_s16, 1  ;;  %s426_s6 = smov (!%p150_p7, %s330_s6), 3 }
  0x12   : > { %s146_s20 = scalar_lea.vmem %s409_s0, %s262_s17  ;;  %s153_s22 = sadd.s32 %s263_s21, %s426_s6 }
  0x13   : > { %v156_v0 = vld [vmem:[%s146_s20] sm:$0xf]  ;;  %v265_v1 = vld [vmem:[%s146_s20 + $0x4] sm:$0xf]  ;;  %s264_s23 = sshll.u32 %s153_s22, 1 }
  0x14   : > { %v159_v2 = vmax.bf16 %v265_v1, %v156_v0  ;;  %s155_s26 = scalar_lea.vmem %s410_s1, %s264_s23 }
  0x16   : > { %v161_v3 = vrot.slane %v159_v2, 2 }
  0x18   : > { %v163_v4 = vmax.bf16 %v161_v3, %v159_v2 }
  0x1a   : > { %164 = vst [vmem:[%s155_s26] sm:$0x3] %v163_v4 }
  0x1b PF: > { %s11_s10 = sadd.s32 1, %s346_s10   ;;  %s411_s6 = smov %s338_s8 }
  0x1c   : > { %p8_p8 = scmp.ge.s32.totalorder %s11_s10, 10   ;;  %s412_s7 = smov %s342_s9 }
  0x1d   : > { %s413_s8 = smov %s416_s11  ;;  %s414_s9 = smov %s420_s12 }
  0x1e   :  { %10 = sbr.rel (!%p8_p8) target bundleno = 3 (0x3), region = 55 }

// kernel: cnn2d_forward.7
= control target key start
LH: loop header
LB: loop body
LE: loop exit
PB: predicated region body
PF: predicated region fallthrough
CT: control target
= control target key end

     0   :  { %v292_v28 = vlaneseq  ;;  %v2139_v36 = vmov 1966171168   ;;  %s2620_s0 = inlined_call_operand.vmem [shape: bf16[2,2048], index: 0, kind: input, shape index: {}]   ;;  %s2621_s1 = inlined_call_operand.vmem [shape: bf16[2048,128], index: 1, kind: input, shape index: {}]   ;;  %s2622_s2 = inlined_call_operand.vmem [shape: f32[1,128], index: 2, kind: input, shape index: {}]   ;;  %s2623_s3 = inlined_call_operand.vmem [shape: bf16[128,128], index: 3, kind: input, shape index: {}]   ;;  %s2624_s4 = inlined_call_operand.vmem [shape: f32[1,128], index: 4, kind: input, shape index: {}]   ;;  %s2625_s5 = inlined_call_operand.hbm [shape: f32[2,128], index: 5, kind: output, shape index: {}]  }
   0x1   :  { %v1979_v0 = vld [vmem:[%s2621_s1 + $0x78] sm:$0xff]   ;;  %v1983_v4 = vld [vmem:[%s2621_s1 + $0x70] sm:$0xff]   ;;  %v1987_v8 = vld [vmem:[%s2621_s1 + $0x68] sm:$0xff]   ;;  %v290_v37 = vunpack.c.l.s4 %v2139_v36 }
   0x2   :  { %v1980_v1 = vld [vmem:[%s2621_s1 + $0xf8] sm:$0xff]   ;;  %1770 = vmatprep.subr.bf16.mxu0 %v1979_v0  ;;  %v1984_v5 = vld [vmem:[%s2621_s1 + $0xf0] sm:$0xff]   ;;  %v1988_v9 = vld [vmem:[%s2621_s1 + $0xe8] sm:$0xff]   ;;  %v293_v33 = vshrl.u32 %v292_v28, 7 }
   0x3   :  { %v1981_v2 = vld [vmem:[%s2621_s1 + $0x38] sm:$0xff]   ;;  %1792 = vmatprep.subr.bf16.mxu1 %v1980_v1  ;;  %v1985_v6 = vld [vmem:[%s2621_s1 + $0x30] sm:$0xff]   ;;  %v1989_v10 = vld [vmem:[%s2621_s1 + $0x28] sm:$0xff]   ;;  %v291_v40 = vunpack.c.0.s8 %v290_v37 }
   0x4   :  { %v1982_v3 = vld [vmem:[%s2621_s1 + $0xb8] sm:$0xff]   ;;  %1771 = vmatpush3.bf16.msra.mxu0 %v1981_v2  ;;  %v1986_v7 = vld [vmem:[%s2621_s1 + $0xb0] sm:$0xff]   ;;  %v1990_v11 = vld [vmem:[%s2621_s1 + $0xa8] sm:$0xff]  }
   0x5   :  { %1793 = vmatpush3.bf16.msra.mxu1 %v1982_v3  ;;  %1772 = vmatprep.subr.bf16.mxu0 %v1983_v4  ;;  %v1991_v12 = vld [vmem:[%s2621_s1 + $0x60] sm:$0xff]   ;;  %v1995_v16 = vld [vmem:[%s2621_s1 + $0x58] sm:$0xff]   ;;  %v1999_v20 = vld [vmem:[%s2621_s1 + $0x50] sm:$0xff]   ;;  %v2278_v41 = vsub.s32 %v291_v40, %v293_v33 }
   0x6   :  { %1794 = vmatprep.subr.bf16.mxu1 %v1984_v5  ;;  %v1992_v13 = vld [vmem:[%s2621_s1 + $0xe0] sm:$0xff]   ;;  %v1996_v17 = vld [vmem:[%s2621_s1 + $0xd8] sm:$0xff]   ;;  %v2000_v21 = vld [vmem:[%s2621_s1 + $0xd0] sm:$0xff]  }
   0x7   :  { %v1993_v14 = vld [vmem:[%s2621_s1 + $0x20] sm:$0xff]   ;;  %v1997_v18 = vld [vmem:[%s2621_s1 + $0x18] sm:$0xff]   ;;  %v2001_v22 = vld [vmem:[%s2621_s1 + $0x10] sm:$0xff]  }
   0x8   :  { %1773 = vmatpush3.bf16.msra.mxu0 %v1985_v6  ;;  %v1994_v15 = vld [vmem:[%s2621_s1 + $0xa0] sm:$0xff]   ;;  %v1998_v19 = vld [vmem:[%s2621_s1 + $0x98] sm:$0xff]   ;;  %v2002_v23 = vld [vmem:[%s2621_s1 + $0x90] sm:$0xff]  }
   0x9   :  { %1795 = vmatpush3.bf16.msra.mxu1 %v1986_v7  ;;  %1774 = vmatprep.subr.bf16.mxu0 %v1987_v8  ;;  %v2003_v24 = vld [vmem:[%s2621_s1 + $0x48] sm:$0xff]   ;;  %v2007_v29 = vld [vmem:[%s2621_s1 + $0x40] sm:$0xff]   ;;  %v2012_v35 = vld [vmem:[%s2621_s1 + $0x178] sm:$0xff]  }
   0xa   :  { %1796 = vmatprep.subr.bf16.mxu1 %v1988_v9  ;;  %v2004_v25 = vld [vmem:[%s2621_s1 + $0xc8] sm:$0xff]   ;;  %v2008_v30 = vld [vmem:[%s2621_s1 + $0xc0] sm:$0xff]   ;;  %v2013_v38 = vld [vmem:[%s2621_s1 + $0x1f8] sm:$0xff]  }
   0xb   :  { %v2005_v26 = vld [vmem:[%s2621_s1 + $0x8] sm:$0xff]   ;;  %v2009_v31 = vld [vmem:[%s2621_s1] sm:$0xff]   ;;  %v2014_v47 = vld [vmem:[%s2621_s1 + $0x138] sm:$0xff]  }
   0xc   :  { %1775 = vmatpush3.bf16.msra.mxu0 %v1989_v10  ;;  %v2006_v27 = vld [vmem:[%s2621_s1 + $0x88] sm:$0xff]   ;;  %v2010_v32 = vld [vmem:[%s2621_s1 + $0x80] sm:$0xff]   ;;  %v2015_v49 = vld [vmem:[%s2621_s1 + $0x1b8] sm:$0xff]  }
   0xd   :  { %1797 = vmatpush3.bf16.msra.mxu1 %v1990_v11  ;;  %1776 = vmatprep.subr.bf16.mxu0 %v1991_v12  ;;  %v28_v34 = vld [vmem:[%s2620_s0] sm:$0xff]  ;;  %v2016_v52 = vld [vmem:[%s2621_s1 + $0x170] sm:$0xff]   ;;  %v2020_v58 = vld [vmem:[%s2621_s1 + $0x168] sm:$0xff]  }
   0xe   :  { %1798 = vmatprep.subr.bf16.mxu1 %v1992_v13  ;;  %v288_v39 = vcombine.high %v28_v34, %v28_v34  ;;  %v295_v42 = vrot.slane %v28_v34, %v2278_v41  ;;  %v2017_v54 = vld [vmem:[%s2621_s1 + $0x1f0] sm:$0xff]   ;;  %v2021_v59 = vld [vmem:[%s2621_s1 + $0x1e8] sm:$0xff]   ;;  %v2024_v62 = vld [vmem:[%s2621_s1 + $0x160] sm:$0xff]  }
   0xf   :  { %v2018_v55 = vld [vmem:[%s2621_s1 + $0x130] sm:$0xff]   ;;  %v2022_v60 = vld [vmem:[%s2621_s1 + $0x128] sm:$0xff]   ;;  %v2025_v63 = vld [vmem:[%s2621_s1 + $0x1e0] sm:$0xff]  }
  0x10   :  { %1777 = vmatpush3.bf16.msra.mxu0 %v1993_v14  ;;  %v2282_v43 = vrot.slane %v288_v39, %v2278_v41  ;;  %v303_v44 = vcombine.high %v295_v42, %v295_v42  ;;  %v311_v45 = vrot.slane %v295_v42, %v2278_v41  ;;  %v2019_v57 = vld [vmem:[%s2621_s1 + $0x1b0] sm:$0xff]   ;;  %v2023_v61 = vld [vmem:[%s2621_s1 + $0x1a8] sm:$0xff]   ;;  %v2026_v0 = vld [vmem:[%s2621_s1 + $0x120] sm:$0xff]  }
  0x11   :  { %1799 = vmatpush3.bf16.msra.mxu1 %v1994_v15  ;;  %1778 = vmatprep.subr.bf16.mxu0 %v1995_v16  ;;  %v2027_v1 = vld [vmem:[%s2621_s1 + $0x1a0] sm:$0xff]   ;;  %v2028_v2 = vld [vmem:[%s2621_s1 + $0x158] sm:$0xff]   ;;  %v2032_v6 = vld [vmem:[%s2621_s1 + $0x150] sm:$0xff]  }
  0x12   :  { %1800 = vmatprep.subr.bf16.mxu1 %v1996_v17  ;;  %v304_v46 = vcombine.high %v2282_v43, %v2282_v43  ;;  %v325_v48 = vrot.slane %v303_v44, %v2278_v41  ;;  %v333_v51 = vcombine.high %v311_v45, %v311_v45  ;;  %v2029_v3 = vld [vmem:[%s2621_s1 + $0x1d8] sm:$0xff]   ;;  %v2033_v7 = vld [vmem:[%s2621_s1 + $0x1d0] sm:$0xff]   ;;  %v2036_v10 = vld [vmem:[%s2621_s1 + $0x148] sm:$0xff]  }
  0x13   :  { %v2030_v4 = vld [vmem:[%s2621_s1 + $0x118] sm:$0xff]   ;;  %v2034_v8 = vld [vmem:[%s2621_s1 + $0x110] sm:$0xff]   ;;  %v2037_v11 = vld [vmem:[%s2621_s1 + $0x1c8] sm:$0xff]  }
  0x14   :  { %1779 = vmatpush3.bf16.msra.mxu0 %v1997_v18  ;;  %v332_v50 = vrot.slane %v304_v46, %v2278_v41  ;;  %1202 = vmatprep.mubr.bf16.mxu0 %v325_v48  ;;  %v335_v53 = vcombine.high %v325_v48, %v325_v48  ;;  %v2031_v5 = vld [vmem:[%s2621_s1 + $0x198] sm:$0xff]   ;;  %v2035_v9 = vld [vmem:[%s2621_s1 + $0x190] sm:$0xff]   ;;  %v2038_v12 = vld [vmem:[%s2621_s1 + $0x108] sm:$0xff]   ;;  %v318_v18 = vrot.slane %v2282_v43, %v2278_v41 }
  0x15   :  { %1801 = vmatpush3.bf16.msra.mxu1 %v1998_v19  ;;  %1780 = vmatprep.subr.bf16.mxu0 %v1999_v20  ;;  %v2039_v13 = vld [vmem:[%s2621_s1 + $0x188] sm:$0xff]   ;;  %v2040_v14 = vld [vmem:[%s2621_s1 + $0x140] sm:$0xff]   ;;  %v2044_v19 = vld [vmem:[%s2621_s1 + $0x278] sm:$0xff]  }
  0x16   :  { %1802 = vmatprep.subr.bf16.mxu1 %v2000_v21  ;;  %v336_v56 = vcombine.high %v332_v50, %v332_v50  ;;  %1242 = vmatprep.mubr.bf16.mxu1 %v335_v53  ;;  %v2041_v15 = vld [vmem:[%s2621_s1 + $0x1c0] sm:$0xff]   ;;  %v2045_v20 = vld [vmem:[%s2621_s1 + $0x2f8] sm:$0xff]   ;;  %v2052_v28 = vld [vmem:[%s2621_s1 + $0x268] sm:$0xff]  }
  0x17   :  { %v2042_v16 = vld [vmem:[%s2621_s1 + $0x100] sm:$0xff]   ;;  %v2046_v21 = vld [vmem:[%s2621_s1 + $0x238] sm:$0xff]   ;;  %v2064_v40 = vld [vmem:[%s2621_s1 + $0x250] sm:$0xff]  }
  0x18   :  { %1781 = vmatpush3.bf16.msra.mxu0 %v2001_v22  ;;  %v2043_v17 = vld [vmem:[%s2621_s1 + $0x180] sm:$0xff]   ;;  %v2047_v22 = vld [vmem:[%s2621_s1 + $0x2b8] sm:$0xff]   ;;  %v2065_v42 = vld [vmem:[%s2621_s1 + $0x2d0] sm:$0xff]  }
  0x19   :  { %1803 = vmatpush3.bf16.msra.mxu1 %v2002_v23  ;;  %1782 = vmatprep.subr.bf16.mxu0 %v2003_v24  ;;  %v334_v23 = vcombine.high %v318_v18, %v318_v18  ;;  %v2048_v24 = vld [vmem:[%s2621_s1 + $0x270] sm:$0xff]   ;;  %v2057_v33 = vld [vmem:[%s2621_s1 + $0x2e0] sm:$0xff]   ;;  %v2060_v36 = vld [vmem:[%s2621_s1 + $0x258] sm:$0xff]  }
  0x1a   :  { %1804 = vmatprep.subr.bf16.mxu1 %v2004_v25  ;;  %v2049_v25 = vld [vmem:[%s2621_s1 + $0x2f0] sm:$0xff]   ;;  %v2058_v34 = vld [vmem:[%s2621_s1 + $0x220] sm:$0xff]   ;;  %v2061_v37 = vld [vmem:[%s2621_s1 + $0x2d8] sm:$0xff]  }
  0x1b   :  { %v2063_v39 = vld [vmem:[%s2621_s1 + $0x298] sm:$0xff]   ;;  %v2066_v43 = vld [vmem:[%s2621_s1 + $0x210] sm:$0xff]   ;;  %v29_v46 = vld [vmem:[%s2620_s0 + $0x8] sm:$0xff] }
  0x1c   :  { %1783 = vmatpush3.bf16.msra.mxu0 %v2005_v26  ;;  %v2050_v26 = vld [vmem:[%s2621_s1 + $0x230] sm:$0xff]   ;;  %v344_v48 = vrot.slane %v29_v46, %v2278_v41 }
  0x1d   :  { %1805 = vmatpush3.bf16.msra.mxu1 %v2006_v27  ;;  %1784 = vmatprep.subr.bf16.mxu0 %v2007_v29  ;;  %v2051_v27 = vld [vmem:[%s2621_s1 + $0x2b0] sm:$0xff]   ;;  %v2053_v29 = vld [vmem:[%s2621_s1 + $0x2e8] sm:$0xff]  }
  0x1e   :  { %1806 = vmatprep.subr.bf16.mxu1 %v2008_v30  ;;  %v2054_v30 = vld [vmem:[%s2621_s1 + $0x228] sm:$0xff]   ;;  %v2067_v44 = vld [vmem:[%s2621_s1 + $0x290] sm:$0xff]  }
  0x20   :  { %1785 = vmatpush3.bf16.msra.mxu0 %v2009_v31  ;;  %v2055_v31 = vld [vmem:[%s2621_s1 + $0x2a8] sm:$0xff]  }
  0x21   :  { %1807 = vmatpush3.bf16.msra.mxu1 %v2010_v32  ;;  %1814 = vmatprep.subr.bf16.mxu0 %v2012_v35  ;;  %v2056_v32 = vld [vmem:[%s2621_s1 + $0x260] sm:$0xff]  }
  0x22   :  { %1836 = vmatprep.subr.bf16.mxu1 %v2013_v38  ;;  %v2059_v35 = vld [vmem:[%s2621_s1 + $0x2a0] sm:$0xff]   ;;  %v2062_v38 = vld [vmem:[%s2621_s1 + $0x218] sm:$0xff]  }
  0x23   :  { %1203 = vmatmul.mubr.bf16.vlgmr.msra.gmra.mxu0 %v311_v45  ;;  %v2068_v45 = vld [vmem:[%s2621_s1 + $0x248] sm:$0xff]  }
  0x24   :  { %1815 = vmatpush3.bf16.msra.mxu0 %v2014_v47  ;;  %1243 = vmatmul.mubr.bf16.vlgmr.msra.gmra.mxu1 %v333_v51  ;;  %v2069_v47 = vld [vmem:[%s2621_s1 + $0x2c8] sm:$0xff]  }
  0x25   :  { %1816 = vmatprep.subr.bf16.mxu0 %v2016_v52  ;;  %1837 = vmatpush3.bf16.msra.mxu1 %v2015_v49  ;;  %v337_v49 = vcombine.high %v29_v46, %v29_v46  ;;  %v2071_v51 = vld [vmem:[%s2621_s1 + $0x288] sm:$0xff]   ;;  %v352_v52 = vcombine.high %v344_v48, %v344_v48 }
  0x26   :  { %1282 = vmatprep.mubr.bf16.mxu0 %v332_v50  ;;  %1838 = vmatprep.subr.bf16.mxu1 %v2017_v54  ;;  %v2070_v50 = vld [vmem:[%s2621_s1 + $0x208] sm:$0xff]   ;;  %v2072_v54 = vld [vmem:[%s2621_s1 + $0x240] sm:$0xff]  }
  0x27   :  { %1322 = vmatprep.mubr.bf16.mxu1 %v336_v56  ;;  %v2470_v53 = vrot.slane %v337_v49, %v2278_v41  ;;  %v374_v56 = vrot.slane %v352_v52, %v2278_v41 }
  0x28   :  { %1817 = vmatpush3.bf16.msra.mxu0 %v2018_v55  ;;  %v2073_v55 = vld [vmem:[%s2621_s1 + $0x2c0] sm:$0xff]  }
  0x29   :  { %1818 = vmatprep.subr.bf16.mxu0 %v2020_v58  ;;  %1839 = vmatpush3.bf16.msra.mxu1 %v2019_v57  ;;  %v353_v57 = vcombine.high %v2470_v53, %v2470_v53  ;;  %v2074_v58 = vld [vmem:[%s2621_s1 + $0x200] sm:$0xff]  }
  0x2a   :  { %1840 = vmatprep.subr.bf16.mxu1 %v2021_v59  ;;  %v2075_v59 = vld [vmem:[%s2621_s1 + $0x280] sm:$0xff]  }
  0x2c   :  { %1819 = vmatpush3.bf16.msra.mxu0 %v2022_v60  ;;  %v384_v60 = vcombine.high %v374_v56, %v374_v56 }
  0x2d   :  { %1820 = vmatprep.subr.bf16.mxu0 %v2024_v62  ;;  %1841 = vmatpush3.bf16.msra.mxu1 %v2023_v61  ;;  %v360_v61 = vrot.slane %v344_v48, %v2278_v41  ;;  %v2076_v62 = vld [vmem:[%s2621_s1 + $0x378] sm:$0xff]  }
  0x2e   :  { %1842 = vmatprep.subr.bf16.mxu1 %v2025_v63  ;;  %v2077_v63 = vld [vmem:[%s2621_s1 + $0x3f8] sm:$0xff]  }
  0x30   :  { %1821 = vmatpush3.bf16.msra.mxu0 %v2026_v0  ;;  %v381_v0 = vrot.slane %v353_v57, %v2278_v41 }
  0x31   :  { %1822 = vmatprep.subr.bf16.mxu0 %v2028_v2  ;;  %1843 = vmatpush3.bf16.msra.mxu1 %v2027_v1  ;;  %v2078_v1 = vld [vmem:[%s2621_s1 + $0x338] sm:$0xff]  }
  0x32   :  { %1844 = vmatprep.subr.bf16.mxu1 %v2029_v3  ;;  %v2079_v2 = vld [vmem:[%s2621_s1 + $0x3b8] sm:$0xff]   ;;  %v382_v3 = vcombine.high %v360_v61, %v360_v61 }
  0x34   :  { %1823 = vmatpush3.bf16.msra.mxu0 %v2030_v4  ;;  %v2080_v4 = vld [vmem:[%s2621_s1 + $0x370] sm:$0xff]  }
  0x35   :  { %1824 = vmatprep.subr.bf16.mxu0 %v2032_v6  ;;  %1845 = vmatpush3.bf16.msra.mxu1 %v2031_v5  ;;  %v2081_v5 = vld [vmem:[%s2621_s1 + $0x3f0] sm:$0xff]   ;;  %v385_v6 = vcombine.high %v381_v0, %v381_v0 }
  0x36   :  { %1846 = vmatprep.subr.bf16.mxu1 %v2033_v7  ;;  %v2082_v7 = vld [vmem:[%s2621_s1 + $0x330] sm:$0xff]  }
  0x38   :  { %1825 = vmatpush3.bf16.msra.mxu0 %v2034_v8  ;;  %v2083_v8 = vld [vmem:[%s2621_s1 + $0x3b0] sm:$0xff]  }
  0x39   :  { %1826 = vmatprep.subr.bf16.mxu0 %v2036_v10  ;;  %1847 = vmatpush3.bf16.msra.mxu1 %v2035_v9  ;;  %v2084_v9 = vld [vmem:[%s2621_s1 + $0x368] sm:$0xff]  }
  0x3a   :  { %1848 = vmatprep.subr.bf16.mxu1 %v2037_v11  ;;  %v2085_v10 = vld [vmem:[%s2621_s1 + $0x3e8] sm:$0xff]  }
  0x3b   :  { %v2086_v11 = vld [vmem:[%s2621_s1 + $0x328] sm:$0xff]  }
  0x3c   :  { %1827 = vmatpush3.bf16.msra.mxu0 %v2038_v12  ;;  %v2087_v12 = vld [vmem:[%s2621_s1 + $0x3a8] sm:$0xff]  }
  0x3d   :  { %1828 = vmatprep.subr.bf16.mxu0 %v2040_v14  ;;  %1849 = vmatpush3.bf16.msra.mxu1 %v2039_v13  ;;  %v2088_v13 = vld [vmem:[%s2621_s1 + $0x360] sm:$0xff]  }
  0x3e   :  { %1850 = vmatprep.subr.bf16.mxu1 %v2041_v15  ;;  %v2089_v14 = vld [vmem:[%s2621_s1 + $0x3e0] sm:$0xff]  }
  0x3f   :  { %v2090_v15 = vld [vmem:[%s2621_s1 + $0x320] sm:$0xff]  }
  0x40   :  { %1829 = vmatpush3.bf16.msra.mxu0 %v2042_v16  ;;  %v2091_v16 = vld [vmem:[%s2621_s1 + $0x3a0] sm:$0xff]  }
  0x41   :  { %1858 = vmatprep.subr.bf16.mxu0 %v2044_v19  ;;  %1851 = vmatpush3.bf16.msra.mxu1 %v2043_v17  ;;  %v2092_v17 = vld [vmem:[%s2621_s1 + $0x358] sm:$0xff]  }
  0x42   :  { %1880 = vmatprep.subr.bf16.mxu1 %v2045_v20  ;;  %v2094_v19 = vld [vmem:[%s2621_s1 + $0x318] sm:$0xff]  }
  0x43   :  { %1283 = vmatmul.mubr.bf16.vlgmr.msra.gmra.mxu0 %v318_v18  ;;  %v2093_v18 = vld [vmem:[%s2621_s1 + $0x3d8] sm:$0xff]  }
  0x44   :  { %1859 = vmatpush3.bf16.msra.mxu0 %v2046_v21  ;;  %1323 = vmatmul.mubr.bf16.vlgmr.msra.gmra.mxu1 %v334_v23  ;;  %v2095_v20 = vld [vmem:[%s2621_s1 + $0x398] sm:$0xff]   ;;  %v2096_v21 = vld [vmem:[%s2621_s1 + $0x350] sm:$0xff]  }
  0x45   :  { %1860 = vmatprep.subr.bf16.mxu0 %v2048_v24  ;;  %1881 = vmatpush3.bf16.msra.mxu1 %v2047_v22  ;;  %v2097_v22 = vld [vmem:[%s2621_s1 + $0x3d0] sm:$0xff]  }
  0x46   :  { %1882 = vmatprep.subr.bf16.mxu1 %v2049_v25  ;;  %1362 = vmatprep.mubr.bf16.mxu0 %v374_v56  ;;  %v2098_v23 = vld [vmem:[%s2621_s1 + $0x310] sm:$0xff]   ;;  %v2100_v25 = vld [vmem:[%s2621_s1 + $0x348] sm:$0xff]  }
  0x47   :  { %1402 = vmatprep.mubr.bf16.mxu1 %v384_v60  ;;  %v2099_v24 = vld [vmem:[%s2621_s1 + $0x390] sm:$0xff]  }
  0x48   :  { %1861 = vmatpush3.bf16.msra.mxu0 %v2050_v26  ;;  %v2101_v26 = vld [vmem:[%s2621_s1 + $0x3c8] sm:$0xff]  }
  0x49   :  { %1862 = vmatprep.subr.bf16.mxu0 %v2052_v28  ;;  %1883 = vmatpush3.bf16.msra.mxu1 %v2051_v27  ;;  %v2102_v27 = vld [vmem:[%s2621_s1 + $0x308] sm:$0xff]   ;;  %v2104_v28 = vld [vmem:[%s2621_s1 + $0x340] sm:$0xff]  }
  0x4a   :  { %1884 = vmatprep.subr.bf16.mxu1 %v2053_v29  ;;  %v2103_v29 = vld [vmem:[%s2621_s1 + $0x388] sm:$0xff]  }
  0x4c   :  { %1863 = vmatpush3.bf16.msra.mxu0 %v2054_v30  ;;  %v2105_v30 = vld [vmem:[%s2621_s1 + $0x3c0] sm:$0xff]  }
  0x4d   :  { %1864 = vmatprep.subr.bf16.mxu0 %v2056_v32  ;;  %1885 = vmatpush3.bf16.msra.mxu1 %v2055_v31 }
  0x4e   :  { %1886 = vmatprep.subr.bf16.mxu1 %v2057_v33 }
  0x50   :  { %1865 = vmatpush3.bf16.msra.mxu0 %v2058_v34 }
  0x51   :  { %1866 = vmatprep.subr.bf16.mxu0 %v2060_v36  ;;  %1887 = vmatpush3.bf16.msra.mxu1 %v2059_v35 }
  0x52   :  { %1888 = vmatprep.subr.bf16.mxu1 %v2061_v37 }
  0x54   :  { %1867 = vmatpush3.bf16.msra.mxu0 %v2062_v38 }
  0x55   :  { %1868 = vmatprep.subr.bf16.mxu0 %v2064_v40  ;;  %1889 = vmatpush3.bf16.msra.mxu1 %v2063_v39 }
  0x56   :  { %1890 = vmatprep.subr.bf16.mxu1 %v2065_v42 }
  0x58   :  { %1869 = vmatpush3.bf16.msra.mxu0 %v2066_v43 }
  0x59   :  { %1870 = vmatprep.subr.bf16.mxu0 %v2068_v45  ;;  %1891 = vmatpush3.bf16.msra.mxu1 %v2067_v44 }
  0x5a   :  { %1892 = vmatprep.subr.bf16.mxu1 %v2069_v47 }
  0x5c   :  { %1871 = vmatpush3.bf16.msra.mxu0 %v2070_v50 }
  0x5d   :  { %1872 = vmatprep.subr.bf16.mxu0 %v2072_v54  ;;  %1893 = vmatpush3.bf16.msra.mxu1 %v2071_v51 }
  0x5e   :  { %1894 = vmatprep.subr.bf16.mxu1 %v2073_v55 }
  0x60   :  { %1873 = vmatpush3.bf16.msra.mxu0 %v2074_v58 }
  0x61   :  { %1902 = vmatprep.subr.bf16.mxu0 %v2076_v62  ;;  %1895 = vmatpush3.bf16.msra.mxu1 %v2075_v59 }
  0x62   :  { %1924 = vmatprep.subr.bf16.mxu1 %v2077_v63 }
  0x63   :  { %1363 = vmatmul.mubr.bf16.vlgmr.msra.gmra.mxu0 %v360_v61 }
  0x64   :  { %1903 = vmatpush3.bf16.msra.mxu0 %v2078_v1  ;;  %1442 = vmatprep.mubr.bf16.mxu0 %v381_v0 }
  0x65   :  { %1403 = vmatmul.mubr.bf16.vlgmr.msra.gmra.mxu1 %v382_v3  ;;  %1904 = vmatprep.subr.bf16.mxu0 %v2080_v4 }
  0x66   :  { %1925 = vmatpush3.bf16.msra.mxu1 %v2079_v2  ;;  %1482 = vmatprep.mubr.bf16.mxu1 %v385_v6 }
  0x67   :  { %1926 = vmatprep.subr.bf16.mxu1 %v2081_v5 }
  0x68   :  { %1905 = vmatpush3.bf16.msra.mxu0 %v2082_v7 }
  0x69   :  { %1906 = vmatprep.subr.bf16.mxu0 %v2084_v9 }
  0x6a   :  { %1927 = vmatpush3.bf16.msra.mxu1 %v2083_v8 }
  0x6b   :  { %1928 = vmatprep.subr.bf16.mxu1 %v2085_v10 }
  0x6c   :  { %1907 = vmatpush3.bf16.msra.mxu0 %v2086_v11 }
  0x6d   :  { %1908 = vmatprep.subr.bf16.mxu0 %v2088_v13 }
  0x6e   :  { %1929 = vmatpush3.bf16.msra.mxu1 %v2087_v12 }
  0x6f   :  { %1930 = vmatprep.subr.bf16.mxu1 %v2089_v14 }
  0x70   :  { %1909 = vmatpush3.bf16.msra.mxu0 %v2090_v15 }
  0x71   :  { %1910 = vmatprep.subr.bf16.mxu0 %v2092_v17 }
  0x72   :  { %1931 = vmatpush3.bf16.msra.mxu1 %v2091_v16 }
  0x73   :  { %1932 = vmatprep.subr.bf16.mxu1 %v2093_v18 }
  0x74   :  { %1911 = vmatpush3.bf16.msra.mxu0 %v2094_v19 }
  0x75   :  { %1912 = vmatprep.subr.bf16.mxu0 %v2096_v21 }
  0x76   :  { %1933 = vmatpush3.bf16.msra.mxu1 %v2095_v20 }
  0x77   :  { %1934 = vmatprep.subr.bf16.mxu1 %v2097_v22 }
  0x78   :  { %1913 = vmatpush3.bf16.msra.mxu0 %v2098_v23 }
  0x79   :  { %1914 = vmatprep.subr.bf16.mxu0 %v2100_v25 }
  0x7a   :  { %1935 = vmatpush3.bf16.msra.mxu1 %v2099_v24 }
  0x7b   :  { %1936 = vmatprep.subr.bf16.mxu1 %v2101_v26 }
  0x7c   :  { %10 = vsyncpa [#allocation4], 0  ;;  %1915 = vmatpush3.bf16.msra.mxu0 %v2102_v27  ;;  %v2106_v31 = vld [vmem:[%s2621_s1 + $0x300] sm:$0xff]   ;;  %v367_v32 = vrot.slane %v2470_v53, %v2278_v41  ;;  %v2109_v35 = vld [vmem:[%s2623_s3 + $0x38] sm:$0xff]   ;;  %v2140_v36 = vmov 0.0   ;;  %vm2141_vm0 = vmmov 0  }
  0x7d   :  { %1916 = vmatprep.subr.bf16.mxu0 %v2104_v28  ;;  %v2107_v33 = vld [vmem:[%s2621_s1 + $0x380] sm:$0xff]   ;;  %26 = vst [vmem:[#allocation2] sm:$0x3] %v2140_v36  ;;  %v2110_v41 = vld [vmem:[%s2623_s3 + $0x30] sm:$0xff]   ;;  %v2111_v37 = vld [vmem:[%s2623_s3 + $0x28] sm:$0xff]   ;;  %s2142_s17 = smov [#allocation3]  }
  0x7e   :  { %1937 = vmatpush3.bf16.msra.mxu1 %v2103_v29  ;;  %v383_v34 = vcombine.high %v367_v32, %v367_v32  ;;  %v2112_v38 = vld [vmem:[%s2623_s3 + $0x20] sm:$0xff]   ;;  %v2113_v39 = vld [vmem:[%s2623_s3 + $0x18] sm:$0xff]   ;;  %v2114_v40 = vld [vmem:[%s2623_s3 + $0x10] sm:$0xff]   ;;  %s1624_s18 = sshll.u32 %s2142_s17, 4  ;;  %s1625_s18 = int_to_ptr.vmem [resolvable:$true] %s1624_s18 }
  0x7f   :  { %1938 = vmatprep.subr.bf16.mxu1 %v2105_v30  ;;  %v2115_v42 = vld [vmem:[%s2623_s3 + $0x8] sm:$0xff]   ;;  %v2116_v43 = vld [vmem:[%s2623_s3] sm:$0xff]   ;;  %s2117_s19 = scalar_lea.vmem %s1625_s18, 32  ;;  %p2122_p1 = scmp.lt.s32.totalorder %s1625_s18, %s1625_s18 }
  0x80   :  { %1917 = vmatpush3.bf16.msra.mxu0 %v2106_v31  ;;  %v1760_v29 = vld [vmem:[%s2622_s2] ss:$0 sm:$0xff]  ;;  %p2118_p0 = scmp.ne.s32.totalorder %s1625_s18, %s2117_s19  ;;  %p2123_p2 = scmp.lt.s32.totalorder %s2117_s19, %s2117_s19 }
  0x81   :  { %1955 = vmatprep.subr.bf16.mxu0 %v2140_v36 }
  0x82   :  { %1939 = vmatpush3.bf16.msra.mxu1 %v2107_v33  ;;  %p2124_p3 = por %p2123_p2, %p2122_p1 }
  0x83   :  { %1443 = vmatmul.mubr.bf16.vlgmr.msra.gmra.mxu0 %v367_v32 }
  0x84   :  { %1956 = vmatpush3.bf16.msra.mxu0 %v2109_v35  ;;  %1971 = vmatprep.mubr.msk.bf16.mxu0 %vm2141_vm0, %v2140_v36  ;;  %v27_v23 = vld [vmem:[#allocation2] sm:$0x3]  ;;  %p2125_p4 = pnand %p2124_p3, %p2118_p0 }
  0x85   :  { %1483 = vmatmul.mubr.bf16.vlgmr.msra.gmra.mxu1 %v383_v34  ;;  %1957 = vmatprep.subr.bf16.mxu0 %v2140_v36  ;;  %v1761_v34 = vld [vmem:[%s2624_s4] ss:$0 sm:$0xff] }
  0x88   :  { %1958 = vmatpush3.bf16.msra.mxu0 %v2110_v41 }
  0x89   :  { %1959 = vmatprep.subr.bf16.mxu0 %v2140_v36 }
  0x8c   :  { %1960 = vmatpush3.bf16.msra.mxu0 %v2111_v37 }
  0x8d   :  { %1961 = vmatprep.subr.bf16.mxu0 %v2140_v36 }
  0x90   :  { %1962 = vmatpush3.bf16.msra.mxu0 %v2112_v38 }
  0x91   :  { %1963 = vmatprep.subr.bf16.mxu0 %v2140_v36 }
  0x94   :  { %1964 = vmatpush3.bf16.msra.mxu0 %v2113_v39 }
  0x95   :  { %1965 = vmatprep.subr.bf16.mxu0 %v2140_v36 }
  0x98   :  { %1966 = vmatpush3.bf16.msra.mxu0 %v2114_v40 }
  0x99   :  { %1967 = vmatprep.subr.bf16.mxu0 %v2140_v36 }
  0x9c   :  { %1968 = vmatpush3.bf16.msra.mxu0 %v2115_v42 }
  0x9d   :  { %1969 = vmatprep.subr.bf16.mxu0 %v2140_v36 }
  0xa0   :  { %1970 = vmatpush3.bf16.msra.mxu0 %v2116_v43 }
  0xe3   :  { %v1786_v44 = vpop.f32.mrf.mxu0 }
  0xe4   :  { %v1808_v45 = vpop.f32.mrf.mxu1 }
  0xe5   :  { %v1787_v46 = vpop.f32.mrf.mxu0 }
  0xe6   :  { %v1788_v47 = vadd.f32 %v1787_v46, %v1786_v44  ;;  %v1809_v48 = vpop.f32.mrf.mxu1 }
  0xe7   :  { %v1789_v49 = vpop.f32.mrf.mxu0  ;;  %v1810_v50 = vadd.f32 %v1809_v48, %v1808_v45 }
  0xe8   :  { %v1811_v51 = vpop.f32.mrf.mxu1 }
  0xe9   :  { %v1790_v52 = vpop.f32.mrf.mxu0  ;;  %v1245_v53 = vadd.f32 %v1810_v50, %v1788_v47 }
  0xea   :  { %v1812_v54 = vpop.f32.mrf.mxu1 }
 0x103   :  { %v1830_v55 = vpop.f32.mrf.mxu0 }
 0x104   :  { %v1852_v56 = vpop.f32.mrf.mxu1 }
 0x105   :  { %v1831_v57 = vpop.f32.mrf.mxu0 }
 0x106   :  { %v1853_v58 = vpop.f32.mrf.mxu1  ;;  %v1832_v7 = vadd.f32 %v1831_v57, %v1830_v55 }
 0x107   :  { %v1833_v59 = vpop.f32.mrf.mxu0  ;;  %v1854_v9 = vadd.f32 %v1853_v58, %v1852_v56 }
 0x108   :  { %v1855_v60 = vpop.f32.mrf.mxu1  ;;  %v1285_v8 = vadd.f32 %v1832_v7, %v1245_v53 }
 0x109   :  { %v1834_v61 = vpop.f32.mrf.mxu0 }
 0x10a   :  { %v1856_v62 = vpop.f32.mrf.mxu1  ;;  %v1325_v11 = vadd.f32 %v1854_v9, %v1285_v8 }
 0x123   :  { %v1874_v63 = vpop.f32.mrf.mxu0 }
 0x125   :  { %v1896_v0 = vpop.f32.mrf.mxu1  ;;  %v1875_v1 = vpop.f32.mrf.mxu0 }
 0x126   :  { %v1876_v10 = vadd.f32 %v1875_v1, %v1874_v63 }
 0x127   :  { %v1897_v2 = vpop.f32.mrf.mxu1  ;;  %v1877_v3 = vpop.f32.mrf.mxu0 }
 0x128   :  { %v1365_v12 = vadd.f32 %v1876_v10, %v1325_v11  ;;  %v1898_v13 = vadd.f32 %v1897_v2, %v1896_v0 }
 0x129   :  { %v1899_v4 = vpop.f32.mrf.mxu1  ;;  %v1878_v5 = vpop.f32.mrf.mxu0 }
 0x12a   :  { %v1405_v17 = vadd.f32 %v1898_v13, %v1365_v12 }
 0x12b   :  { %v1900_v6 = vpop.f32.mrf.mxu1 }
 0x143   :  { %v1918_v14 = vpop.f32.mrf.mxu0 }
 0x145   :  { %v1940_v15 = vpop.f32.mrf.mxu1  ;;  %v1919_v16 = vpop.f32.mrf.mxu0 }
 0x146   :  { %v1920_v18 = vadd.f32 %v1919_v16, %v1918_v14 }
 0x147   :  { %v1941_v19 = vpop.f32.mrf.mxu1  ;;  %v1921_v20 = vpop.f32.mrf.mxu0 }
 0x148   :  { %v1445_v21 = vadd.f32 %v1920_v18, %v1405_v17  ;;  %v1942_v22 = vadd.f32 %v1941_v19, %v1940_v15 }
 0x149   :  { %v1943_v24 = vpop.f32.mrf.mxu1  ;;  %v1922_v25 = vpop.f32.mrf.mxu0 }
 0x14a   :  { %v1485_v26 = vadd.f32 %v1942_v22, %v1445_v21 }
 0x14b   :  { %v1944_v27 = vpop.f32.mrf.mxu1 }
 0x14c   :  { %v1490_v28 = vadd.f32 %v1485_v26, %v27_v23 }
 0x14e   :  { %1491 = vst [vmem:[#allocation2] sm:$0x3] %v1490_v28 }
 0x155   :  { %v1495_v30 = vld [vmem:[#allocation2] sm:$0x3] }
 0x156   :  { %v1503_v31 = vadd.f32 %v1760_v29, %v1495_v30 }
 0x158   :  { %v1504_v32 = vmax.f32 %v1503_v31, 0.0 }
 0x15a   :  { %v1505_v33 = vpack.c.bf16 %v1504_v32, %v1504_v32 }
 0x15c   :  { %1972 = vmatmul.mubr.bf16.vlgmr.msra.gmra.mxu0 %v1505_v33 }
 0x21c   :  { %v1611_v35 = vpop.f32.mrf.mxu0 }
 0x21d   :  { %v1612_v36 = vadd.f32 %v1761_v34, %v1611_v35 }
 0x21e   :  { %v1973_v41 = vpop.f32.mrf.mxu0 }
 0x21f   :  { %1617 = vst [vmem:[#allocation3] sm:$0x3] %v1612_v36 }
 0x220   :  { %v1614_v37 = vpop.f32.mrf.mxu0 }
 0x221   :  { %2128 = shalt.err (!%p2125_p4)
}
 0x222   :  { %1627 = dma.vmem_to_hbm [thread:$0]  %s1625_s18, 32, %s2625_s5, [#allocation4]   ;;  %v1974_v38 = vpop.f32.mrf.mxu0 }
 0x223   :  { %2137 = dma.done.wait [#allocation4], 32  }
 0x224   :  { %2138 = vsyncadd [#allocation4], 4294967264 }
 0x225   :  { %1631 = vsyncpa [#allocation4], 1 }

</bundles_post_ra>
